<compile_context>
chip_gen: v7x
topology: tpu7x:2x2x1
jax: 0.10.0
libtpu: 0.0.40
codegen_flags: <defaults>
</compile_context>

<pallas_src>
import jax
import jax.numpy as jnp
from jax.experimental import pallas as pl
from jax.experimental.pallas import tpu as pltpu


def snake_kernel(x_ref, a_ref, inv_ref, o_ref):
    # x_ref:   (tile_r, tile_t) tile of the flattened (B*C, T) input
    # a_ref:   (tile_r, 1) f32  = exp(alpha) broadcast per row
    # inv_ref: (tile_r, 1) f32  = 1/(exp(alpha)+1e-9) per row
    x = x_ref[...].astype(jnp.float32)      # f32 math regardless of storage dtype
    a = a_ref[...]                          # lane-broadcast over tile_t
    inv_a = inv_ref[...]
    s = jnp.sin(x * a)                      # VPU mul + sin polynomial (+EUP)
    o_ref[...] = (x + inv_a * (s * s)).astype(o_ref.dtype)


def _default_tiles(R, T, itemsize, max_block_bytes):
    """Pick (tile_r, tile_t) targeting ~max_block_bytes of x per grid step.

    tile_r maps to the sublane axis (multiple of 8, or the full extent R);
    tile_t maps to the lane axis (multiple of 128, or the full extent T).
    """
    # Cap rows so even a single 128-lane column fits the byte budget.
    max_rows = max(8, ((max_block_bytes // (128 * itemsize)) // 8) * 8)
    tile_r = R if R <= max_rows else max_rows
    # Spend the remaining budget along time (lane axis).
    budget_t = max_block_bytes // (tile_r * itemsize)
    tile_t = T if T <= budget_t else max(128, (budget_t // 128) * 128)
    return tile_r, tile_t


def snake(x, alpha, *, tile_r=None, tile_t=None,
          max_block_bytes=2 * 1024 * 1024, donate_x=False):
    """Snake activation.

    x:     (B, C, T) array (f32 or bf16)
    alpha: (1, C, 1) array (pre-exp, as in the nn.Parameter)
    """
    B, C, T = x.shape
    assert alpha.shape == (1, C, 1)
    R = B * C

    # Per-channel transcendentals hoisted out of the hot loop, kept in f32
    # (tiny C-length arrays; preserves the 1e-9 guard / reference numerics
    # even for bf16 activations).  Broadcast to one value per flattened row.
    a32 = jnp.exp(alpha.astype(jnp.float32))            # (1, C, 1)
    inv32 = 1.0 / (a32 + 1e-9)                          # (1, C, 1)
    a_rows = jnp.broadcast_to(a32, (B, C, 1)).reshape(R, 1)
    inv_rows = jnp.broadcast_to(inv32, (B, C, 1)).reshape(R, 1)

    # Free reshape: merge batch & channel so block bytes don't collapse when
    # C (or B) is small.
    x2 = x.reshape(R, T)

    d_r, d_t = _default_tiles(R, T, x.dtype.itemsize, max_block_bytes)
    tile_r = d_r if tile_r is None else tile_r
    tile_t = d_t if tile_t is None else tile_t

    grid = (pl.cdiv(R, tile_r), pl.cdiv(T, tile_t))  # partial tail blocks are masked

    out2 = pl.pallas_call(
        snake_kernel,
        out_shape=jax.ShapeDtypeStruct((R, T), x.dtype),
        grid_spec=pltpu.PrefetchScalarGridSpec(
            num_scalar_prefetch=0,
            grid=grid,
            in_specs=[
                pl.BlockSpec((tile_r, tile_t), lambda r, t: (r, t)),  # x tile
                pl.BlockSpec((tile_r, 1), lambda r, t: (r, 0)),       # exp(alpha)
                pl.BlockSpec((tile_r, 1), lambda r, t: (r, 0)),       # 1/(exp(alpha)+eps)
            ],
            out_specs=pl.BlockSpec((tile_r, tile_t), lambda r, t: (r, t)),
        ),
        compiler_params=pltpu.CompilerParams(
            # Pure elementwise: both axes independent -> v7x megacore sharding.
            dimension_semantics=("parallel", "parallel"),
        ),
        # Only donate when the caller is done with x (e.g. inside a jit where
        # x is dead afterwards); otherwise aliasing would force an extra copy.
        input_output_aliases=({0: 0} if donate_x else {}),
    )(x2, a_rows, inv_rows)

    return out2.reshape(B, C, T)


def snake_ref(x, alpha):
    a = jnp.exp(alpha)
    return x + 1.0 / (a + 1e-9) * jnp.sin(x * a) ** 2


if __name__ == "__main__":
    key = jax.random.PRNGKey(0)
    kx, ka = jax.random.split(key)

    # Small shapes; T deliberately not a multiple of 128.
    B, C, T = 2, 8, 600
    x = jax.random.normal(kx, (B, C, T), dtype=jnp.float32)
    alpha = 0.1 * jax.random.normal(ka, (1, C, 1), dtype=jnp.float32)

    ref = snake_ref(x, alpha)

    # Default adaptive tiling (single full-extent block at this small size).
    out = jax.block_until_ready(snake(x, alpha))
    assert out.shape == x.shape and out.dtype == x.dtype
    assert jnp.allclose(out, ref, atol=1e-5, rtol=1e-5)

    # Forced small tiles: multi-step grid with a masked partial tail block
    # along T — no wrapper pad / slice passes.
    out2 = jax.block_until_ready(snake(x, alpha, tile_r=8, tile_t=256))
    assert jnp.allclose(out2, ref, atol=1e-5, rtol=1e-5)

    print("KERNEL_OK")
</pallas_src>

<mosaic_0001>
module attributes {stable_mosaic.version = 11 : i64} {
  func.func @snake_kernel(%arg0: i32, %arg1: i32, %arg2: memref<16x600xf32, #tpu.memory_space<vmem>>, %arg3: memref<16x1xf32, #tpu.memory_space<vmem>>, %arg4: memref<16x1xf32, #tpu.memory_space<vmem>>, %arg5: memref<16x600xf32, #tpu.memory_space<vmem>>) attributes {dimension_semantics = [#tpu.dimension_semantics<parallel>, #tpu.dimension_semantics<parallel>], iteration_bounds = array<i64: 1, 1>, scalar_prefetch = 0 : i64, scratch_operands = 0 : i64, tpu.core_type = #tpu.core_type<tc>, window_params = [{transform_indices = @transform_0, window_bounds = array<i64: 16, 600>}, {transform_indices = @transform_1, window_bounds = array<i64: 16, 1>}, {transform_indices = @transform_2, window_bounds = array<i64: 16, 1>}, {transform_indices = @transform_3, window_bounds = array<i64: 16, 600>}]} {
    %c0 = arith.constant 0 : index
    %c0_0 = arith.constant 0 : index
    %0 = vector.load %arg2[%c0, %c0_0] : memref<16x600xf32, #tpu.memory_space<vmem>>, vector<16x600xf32>
    %c0_1 = arith.constant 0 : index
    %c0_2 = arith.constant 0 : index
    %1 = vector.load %arg3[%c0_1, %c0_2] : memref<16x1xf32, #tpu.memory_space<vmem>>, vector<16x1xf32>
    %c0_3 = arith.constant 0 : index
    %c0_4 = arith.constant 0 : index
    %2 = vector.load %arg4[%c0_3, %c0_4] : memref<16x1xf32, #tpu.memory_space<vmem>>, vector<16x1xf32>
    %3 = vector.broadcast %1 : vector<16x1xf32> to vector<16x600xf32>
    %4 = arith.mulf %0, %3 : vector<16x600xf32>
    %5 = math.sin %4 : vector<16x600xf32>
    %6 = arith.mulf %5, %5 : vector<16x600xf32>
    %7 = vector.broadcast %2 : vector<16x1xf32> to vector<16x600xf32>
    %8 = arith.mulf %7, %6 : vector<16x600xf32>
    %9 = arith.addf %0, %8 : vector<16x600xf32>
    %c0_5 = arith.constant 0 : index
    %c0_6 = arith.constant 0 : index
    %10 = vector.load %arg5[%c0_5, %c0_6] : memref<16x600xf32, #tpu.memory_space<vmem>>, vector<16x600xf32>
    tpu.vector_store %arg5[%c0_5, %c0_6], %9 {strides = array<i32>} : memref<16x600xf32, #tpu.memory_space<vmem>>, vector<16x600xf32>,
    return
  }
  func.func @transform_0(%arg0: i32, %arg1: i32) -> (i32, i32) {
    %c0_i32 = arith.constant 0 : i32
    return %arg0, %arg1 : i32, i32
  }
  func.func @transform_1(%arg0: i32, %arg1: i32) -> (i32, i32) {
    %c0_i32 = arith.constant 0 : i32
    %c0_i32_0 = arith.constant 0 : i32
    return %arg0, %c0_i32 : i32, i32
  }
  func.func @transform_2(%arg0: i32, %arg1: i32) -> (i32, i32) {
    %c0_i32 = arith.constant 0 : i32
    %c0_i32_0 = arith.constant 0 : i32
    return %arg0, %c0_i32 : i32, i32
  }
  func.func @transform_3(%arg0: i32, %arg1: i32) -> (i32, i32) {
    %c0_i32 = arith.constant 0 : i32
    return %arg0, %arg1 : i32, i32
  }
}

</mosaic_0001>

<bundles_post_ra>
// kernel: tpu_custom_call.1
= control target key start
LH: loop header
LB: loop body
LE: loop exit
PB: predicated region body
PF: predicated region fallthrough
CT: control target
= control target key end

     0   :  { %8 = vsyncpa [#allocation3], 0  ;;  %s2388_s0 = inlined_call_operand.hbm [shape: f32[16,600], index: 0, kind: input, shape index: {}]   ;;  %s2389_s1 = inlined_call_operand.vmem [shape: f32[16,1], index: 1, kind: input, shape index: {}]   ;;  %s2390_s2 = inlined_call_operand.vmem [shape: f32[16,1], index: 2, kind: input, shape index: {}]   ;;  %s2391_s3 = inlined_call_operand.hbm [shape: f32[16,600], index: 3, kind: output, shape index: {}]  }
   0x1   :  { %9 = vsyncpa [#allocation4], 0  ;;  %s1362_s12 = smov [#allocation2]   ;;  %s1314_s16 = scalar_lea.hbm %s2388_s0, 1280 }
   0x2   :  { %s15_s13 = sshll.u32 %s1362_s12, 4  ;;  %p1315_p0 = scmp.ne.s32.totalorder %s2388_s0, %s1314_s16  ;;  %s16_s13 = int_to_ptr.vmem [resolvable:$true] %s15_s13 }
   0x3   :  { %p1318_p1 = scmp.lt.u32.totalorder %s1314_s16, %s2388_s0 }
   0x5   :  { %p1320_p2 = pnand %p1318_p1, %p1315_p0 }
   0x7   :  { %1323 = shalt.err (!%p1320_p2)
}
   0x8   :  { %s1324_s21 = scalar_lea.vmem %s16_s13, 1280  ;;  %p1329_p4 = scmp.lt.s32.totalorder %s16_s13, %s16_s13 }
   0x9   :  { %p1325_p3 = scmp.ne.s32.totalorder %s16_s13, %s1324_s21  ;;  %p1330_p5 = scmp.lt.s32.totalorder %s1324_s21, %s1324_s21 }
   0xb   :  { %p1331_p6 = por %p1330_p5, %p1329_p4 }
   0xd   :  { %p1332_p7 = pnand %p1331_p6, %p1325_p3 }
   0xf   :  { %1335 = shalt.err (!%p1332_p7)
}
  0x10   :  { %s1363_s22 = smov 640   ;;  %s1364_s23 = smov 40  }
  0x11   :  { %21 = dma.hbm_to_vmem [thread:$0]  %s2388_s0, 1280, %s16_s13, [#allocation3], %s1363_s22, %s1363_s22, %s1364_s23  }
  0x12   :  { %1358 = dma.done.wait [#allocation3], 1280  }
  0x13   :  { %1359 = vsyncadd [#allocation3], 4294966016  ;;  %v1365_v0 = vmov 0   ;;  %v39_v1 = vld [vmem:[%s2389_s1] sm:$0xff]  ;;  %v40_v3 = vld [vmem:[%s2389_s1 + $0x8] sm:$0xff]  ;;  %s1372_s1 = smov [#allocation5]  }
  0x14   :  { %1262 = vset.pattern.permute.xlu0 %v1365_v0  ;;  %1263 = vset.pattern.permute.xlu1 %v1365_v0  ;;  %v41_v2 = vld [vmem:[%s2390_s2] sm:$0xff]  ;;  %v42_v4 = vld [vmem:[%s2390_s2 + $0x8] sm:$0xff]  ;;  %v31_v8 = vld [vmem:[#allocation2 + $0x10] sm:$0xff]  ;;  %v1366_v37 = vmov 683565275   ;;  %s1159_s2 = sshll.u32 %s1372_s1, 4  ;;  %s1160_s2 = int_to_ptr.vmem [resolvable:$true] %s1159_s2 }
  0x15   :  { %45 = vperm.xlu0 %1262, %v39_v1   ;;  %1115 = vperm.xlu1 %1263, %v41_v2   ;;  %v29_v5 = vld [vmem:[#allocation2] sm:$0xff]  ;;  %v30_v6 = vld [vmem:[#allocation2 + $0x8] sm:$0xff]  ;;  %v1367_v41 = vmov 2475754826   ;;  %v1368_v43 = vmov 2131351028   ;;  %p1341_p9 = scmp.lt.s32.totalorder %s1160_s2, %s1160_s2 }
  0x16   :  { %v1369_v45 = vmov 2102212464   ;;  %v1370_v47 = vmov 920167782   ;;  %v1371_v54 = vmov 1326507024  }
  0x17   :  { %s1336_s6 = scalar_lea.vmem %s1160_s2, 1280 }
  0x18   :  { %p1337_p8 = scmp.ne.s32.totalorder %s1160_s2, %s1336_s6  ;;  %p1342_p10 = scmp.lt.s32.totalorder %s1336_s6, %s1336_s6 }
  0x19   :  { %50 = vperm.xlu0 %1262, %v40_v3   ;;  %1120 = vperm.xlu1 %1263, %v42_v4  }
  0x1a   :  { %p1343_p11 = por %p1342_p10, %p1341_p9 }
  0x1c   :  { %p1344_p12 = pnand %p1343_p11, %p1337_p8 }
  0x94   :  { %v1420_v7 = vpop.permute.xlu0 %45 }
  0x95   :  { %v1423_v9 = vmul.f32 %v1420_v7, %v29_v5  ;;  %v1426_v10 = vmul.f32 %v1420_v7, %v30_v6  ;;  %v1431_v13 = vmul.f32 %v1420_v7, %v31_v8 }
  0x97   :  { %v63_v11 = vand.u32 2147483647, %v1423_v9  ;;  %v66_v12 = vand.u32 2139095040, %v1423_v9  ;;  %v167_v14 = vand.u32 2147483647, %v1426_v10  ;;  %v170_v15 = vand.u32 2139095040, %v1426_v10 }
  0x98   :  { %v274_v21 = vand.u32 2139095040, %v1431_v13 }
  0x99   :  { %v67_v16 = vshrl.u32 %v66_v12, 23  ;;  %v70_v17 = vand.u32 8388607, %v63_v11  ;;  %v171_v18 = vshrl.u32 %v170_v15, 23  ;;  %v174_v19 = vand.u32 8388607, %v167_v14 }
  0x9a   :  { %v275_v24 = vshrl.u32 %v274_v21, 23 }
  0x9b   :  { %v1171_v20 = vadd.s32 4294967169, %v67_v16  ;;  %v1175_v22 = vadd.s32 4294967169, %v171_v18  ;;  %v71_v25 = vor.u32 8388608, %v70_v17  ;;  %v175_v26 = vor.u32 8388608, %v174_v19 }
  0x9c   :  { %v1179_v28 = vadd.s32 4294967169, %v275_v24 }
  0x9d   :  { %v73_v23 = vadd.s32 1, %v1171_v20  ;;  %v177_v27 = vadd.s32 1, %v1175_v22  ;;  %v1440_v33 = vshll.u32 %v71_v25, 8  ;;  %v1442_v34 = vshll.u32 %v175_v26, 8 }
  0x9e   :  { %v1444_v35 = vadd.s32 1, %v1179_v28 }
  0x9f   :  { %vm74_vm0 = vcmp.gt.s32.totalorder %v73_v23, 0  ;;  %vm178_vm1 = vcmp.gt.s32.totalorder %v177_v27, 0 }
  0xa0   :  { %v75_v29 = vsel %vm74_vm0, %v73_v23, 0  ;;  %v179_v32 = vsel %vm178_vm1, %v177_v27, 0  ;;  %vm282_vm11 = vcmp.gt.s32.totalorder %v1444_v35, 0 }
  0xa1   :  { %v76_v30 = vshrl.u32 %v75_v29, 5  ;;  %v77_v31 = vand.u32 31, %v75_v29  ;;  %v1447_v39 = vshrl.u32 %v179_v32, 5  ;;  %v181_v40 = vand.u32 31, %v179_v32 }
  0xa3   :  { %v78_v36 = vsub.s32 32, %v77_v31  ;;  %v80_v38 = vshll.u32 %v1366_v37, %v77_v31  ;;  %v83_v42 = vshll.u32 %v1367_v41, %v77_v31  ;;  %v86_v44 = vshll.u32 %v1368_v43, %v77_v31 }
  0xa4   :  { %v89_v46 = vshll.u32 %v1369_v45, %v77_v31  ;;  %v92_v48 = vshll.u32 %v1370_v47, %v77_v31  ;;  %vm95_vm2 = vcmp.lt.s32.totalorder %v76_v30, 1  ;;  %vm96_vm3 = vcmp.lt.s32.totalorder %v76_v30, 2 }
  0xa5   :  { %v81_v49 = vshrl.u32 %v1367_v41, %v78_v36  ;;  %v84_v50 = vshrl.u32 %v1368_v43, %v78_v36  ;;  %v87_v51 = vshrl.u32 %v1369_v45, %v78_v36  ;;  %v79_v52 = vshrl.u32 %v1366_v37, %v78_v36 }
  0xa6   :  { %v90_v53 = vshrl.u32 %v1370_v47, %v78_v36  ;;  %v93_v55 = vshrl.u32 %v1371_v54, %v78_v36  ;;  %v182_v59 = vsub.s32 32, %v181_v40  ;;  %vm97_vm4 = vcmp.lt.s32.totalorder %v76_v30, 3 }
  0xa7   :  { %v82_v56 = vor.u32 %v81_v49, %v80_v38  ;;  %v85_v57 = vor.u32 %v84_v50, %v83_v42  ;;  %v88_v58 = vor.u32 %v87_v51, %v86_v44  ;;  %vm98_vm5 = vcmp.lt.s32.totalorder %v76_v30, 4 }
  0xa8   :  { %v91_v60 = vor.u32 %v90_v53, %v89_v46  ;;  %v94_v61 = vor.u32 %v93_v55, %v92_v48  ;;  %v184_v5 = vshll.u32 %v1366_v37, %v181_v40  ;;  %v185_v12 = vshrl.u32 %v1367_v41, %v182_v59 }
  0xa9   :  { %v99_v62 = vsel %vm95_vm2, %v79_v52, %v82_v56  ;;  %v100_v63 = vsel %vm98_vm5, %v88_v58, 2102212464  ;;  %v103_v0 = vsel %vm95_vm2, %v82_v56, %v85_v57  ;;  %v107_v1 = vsel %vm95_vm2, %v85_v57, %v88_v58 }
  0xaa   :  { %v101_v2 = vsel %vm97_vm4, %v85_v57, %v100_v63  ;;  %v104_v3 = vsel %vm98_vm5, %v91_v60, 920167782  ;;  %v108_v4 = vsel %vm98_vm5, %v94_v61, 1326507024  ;;  %v187_v15 = vshll.u32 %v1367_v41, %v181_v40 }
  0xab   :  { %v105_v6 = vsel %vm97_vm4, %v88_v58, %v104_v3  ;;  %v109_v8 = vsel %vm97_vm4, %v91_v60, %v108_v4  ;;  %v102_v16 = vsel %vm96_vm3, %v99_v62, %v101_v2  ;;  %v188_v19 = vshrl.u32 %v1368_v43, %v182_v59  ;;  %v32_v2 = vld [vmem:[#allocation2 + $0x18] sm:$0xff] }
  0xac   :  { %v106_v17 = vsel %vm96_vm3, %v103_v0, %v105_v6  ;;  %v110_v18 = vsel %vm96_vm3, %v107_v1, %v109_v8  ;;  %v186_v24 = vor.u32 %v185_v12, %v184_v5  ;;  %v190_v26 = vshll.u32 %v1368_v43, %v181_v40 }
  0xad   :  { %v1470_v20 = vmul.u32.u64.low %v1440_v33, %v110_v18  ;;  %v1471_v21 = vmul.u32.u64.high %v1440_v33, %v110_v18, %v1470_v20  ;;  %v1474_v22 = vmul.u32.u64.low %v1440_v33, %v106_v17  ;;  %v1475_v23 = vmul.u32.u64.high %v1440_v33, %v106_v17, %v1474_v22 }
  0xae   :  { %v189_v25 = vor.u32 %v188_v19, %v187_v15  ;;  %v191_v27 = vshrl.u32 %v1369_v45, %v182_v59  ;;  %v183_v28 = vshrl.u32 %v1366_v37, %v182_v59  ;;  %v193_v29 = vshll.u32 %v1369_v45, %v181_v40 }
  0xaf   :  { %v194_v30 = vshrl.u32 %v1370_v47, %v182_v59  ;;  %v197_v31 = vshrl.u32 %v1371_v54, %v182_v59  ;;  %v118_v32 = vmul.u32 %v1440_v33, %v102_v16  ;;  %v196_v38 = vshll.u32 %v1370_v47, %v181_v40 }
  0xb0   :  { %v192_v36 = vor.u32 %v191_v27, %v190_v26  ;;  %vm199_vm6 = vcmp.lt.s32.totalorder %v1447_v39, 1  ;;  %vm120_vm7 = vc.u32 %v1471_v21, %v1474_v22  ;;  %v121_v42 = vadd.s32 1, %v1475_v23 }
  0xb1   :  { %v195_v44 = vor.u32 %v194_v30, %v193_v29  ;;  %vm200_vm8 = vcmp.lt.s32.totalorder %v1447_v39, 2  ;;  %v198_v46 = vor.u32 %v197_v31, %v196_v38  ;;  %vm201_vm9 = vcmp.lt.s32.totalorder %v1447_v39, 3 }
  0xb2   :  { %vm202_vm10 = vcmp.lt.s32.totalorder %v1447_v39, 4  ;;  %v207_v48 = vsel %vm199_vm6, %v186_v24, %v189_v25  ;;  %v122_v33 = vsel %vm120_vm7, %v121_v42, %v1475_v23  ;;  %v211_v50 = vsel %vm199_vm6, %v189_v25, %v192_v36 }
  0xb3   :  { %v204_v49 = vsel %vm202_vm10, %v192_v36, 2102212464  ;;  %v208_v40 = vsel %vm202_vm10, %v195_v44, 920167782  ;;  %v123_v51 = vadd.s32 %v122_v33, %v118_v32  ;;  %v203_v52 = vsel %vm199_vm6, %v183_v28, %v186_v24 }
  0xb4   :  { %v209_v53 = vsel %vm201_vm9, %v192_v36, %v208_v40  ;;  %v212_v55 = vsel %vm202_vm10, %v198_v46, 1326507024  ;;  %v205_v56 = vsel %vm201_vm9, %v189_v25, %v204_v49  ;;  %v283_v1 = vsel %vm282_vm11, %v1444_v35, 0 }
  0xb5   :  { %v210_v57 = vsel %vm200_vm8, %v207_v48, %v209_v53  ;;  %v213_v58 = vsel %vm201_vm9, %v195_v44, %v212_v55  ;;  %v124_v59 = vadd.s32 536870912, %v123_v51  ;;  %v206_v4 = vsel %vm200_vm8, %v203_v52, %v205_v56 }
  0xb6   :  { %v214_v60 = vsel %vm200_vm8, %v211_v50, %v213_v58  ;;  %v1500_v61 = vmul.u32.u64.low %v1442_v34, %v210_v57  ;;  %v1501_v62 = vmul.u32.u64.high %v1442_v34, %v210_v57, %v1500_v61  ;;  %v271_v5 = vand.u32 2147483647, %v1431_v13 }
  0xb7   :  { %v1505_v63 = vmul.u32.u64.low %v1442_v34, %v214_v60  ;;  %v1506_v0 = vmul.u32.u64.high %v1442_v34, %v214_v60, %v1505_v63  ;;  %v1509_v3 = vshrl.u32 %v124_v59, 30  ;;  %v285_v6 = vand.u32 31, %v283_v1 }
  0xb8   :  { %v225_v12 = vadd.s32 1, %v1501_v62  ;;  %v1517_v15 = vmul.f32 %v1420_v7, %v32_v2  ;;  %v222_v16 = vmul.u32 %v1442_v34, %v206_v4  ;;  %v278_v18 = vand.u32 8388607, %v271_v5 }
  0xb9   :  { %v126_v8 = vshll.u32 %v1509_v3, 30  ;;  %vm224_vm12 = vc.u32 %v1506_v0, %v1500_v61  ;;  %v286_v35 = vsub.s32 32, %v285_v6  ;;  %v284_v31 = vshrl.u32 %v283_v1, 5 }
  0xba   :  { %v226_v39 = vsel %vm224_vm12, %v225_v12, %v1501_v62  ;;  %v378_v34 = vand.u32 2139095040, %v1517_v15  ;;  %v279_v27 = vor.u32 8388608, %v278_v18  ;;  %v288_v32 = vshll.u32 %v1366_v37, %v285_v6 }
  0xbb   :  { %v1522_v17 = vsub.s32 %v123_v51, %v126_v8  ;;  %v227_v19 = vadd.s32 %v226_v39, %v222_v16  ;;  %v289_v24 = vshrl.u32 %v1367_v41, %v286_v35  ;;  %v292_v25 = vshrl.u32 %v1368_v43, %v286_v35 }
  0xbc   :  { %v295_v28 = vshrl.u32 %v1369_v45, %v286_v35  ;;  %v298_v29 = vshrl.u32 %v1370_v47, %v286_v35  ;;  %v291_v36 = vshll.u32 %v1367_v41, %v285_v6  ;;  %v294_v42 = vshll.u32 %v1368_v43, %v285_v6 }
  0xbd   :  { %v129_v20 = vsub.s32 0, %v1522_v17  ;;  %v228_v23 = vadd.s32 536870912, %v227_v19  ;;  %v297_v44 = vshll.u32 %v1369_v45, %v285_v6  ;;  %v301_v46 = vshrl.u32 %v1371_v54, %v286_v35 }
  0xbe   :  { %v290_v33 = vor.u32 %v289_v24, %v288_v32  ;;  %v293_v49 = vor.u32 %v292_v25, %v291_v36  ;;  %v296_v50 = vor.u32 %v295_v28, %v294_v42  ;;  %v300_v52 = vshll.u32 %v1370_v47, %v285_v6 }
  0xbf   :  { %v1172_v26 = vmin.u32 %v129_v20, %v1522_v17  ;;  %v1534_v30 = vshrl.u32 %v228_v23, 30  ;;  %v299_v51 = vor.u32 %v298_v29, %v297_v44  ;;  %v319_v55 = vshll.u32 %v279_v27, 8 }
  0xc0   :  { %v302_v56 = vor.u32 %v301_v46, %v300_v52  ;;  %vm303_vm14 = vcmp.lt.s32.totalorder %v284_v31, 1  ;;  %v379_v57 = vshrl.u32 %v378_v34, 23  ;;  %vm306_vm15 = vcmp.lt.s32.totalorder %v284_v31, 4 }
  0xc1   :  { %v131_v38 = vclz %v1172_v26  ;;  %v230_v48 = vshll.u32 %v1534_v30, 30  ;;  %v311_v60 = vsel %vm303_vm14, %v290_v33, %v293_v49  ;;  %vm305_vm0 = vcmp.lt.s32.totalorder %v284_v31, 3 }
  0xc2   :  { %v308_v63 = vsel %vm306_vm15, %v296_v50, 2102212464  ;;  %v312_v1 = vsel %vm306_vm15, %v299_v51, 920167782  ;;  %v287_v4 = vshrl.u32 %v1366_v37, %v286_v35  ;;  %vm304_vm1 = vcmp.lt.s32.totalorder %v284_v31, 2 }
  0xc3   :  { %v1173_v40 = vadd.s32 4294967294, %v131_v38  ;;  %v1543_v53 = vsub.s32 %v227_v19, %v230_v48  ;;  %v313_v6 = vsel %vm305_vm0, %v296_v50, %v312_v1  ;;  %v315_v16 = vsel %vm303_vm14, %v293_v49, %v296_v50  ;;  %v34_v50 = vld [vmem:[#allocation2 + $0x28] sm:$0xff] }
  0xc4   :  { %v314_v12 = vsel %vm304_vm1, %v311_v60, %v313_v6  ;;  %v316_v39 = vsel %vm306_vm15, %v302_v56, 1326507024  ;;  %v307_v19 = vsel %vm303_vm14, %v287_v4, %v290_v33  ;;  %v309_v20 = vsel %vm305_vm0, %v293_v49, %v308_v63  ;;  %v33_v49 = vld [vmem:[#allocation2 + $0x20] sm:$0xff]  ;;  %v51_v56 = vpop.permute.xlu0 %50 }
  0xc5   :  { %vm1174_vm13 = vcmp.lt.s32.totalorder %v1173_v40, 0  ;;  %v233_v59 = vsub.s32 0, %v1543_v53  ;;  %v1183_v23 = vadd.s32 4294967169, %v379_v57  ;;  %v119_v24 = vadd.s32 %v1474_v22, %v1471_v21  ;;  %v35_v57 = vld [vmem:[#allocation2 + $0x30] sm:$0xff] }
  0xc6   :  { %v134_v58 = vsel %vm1174_vm13, 0, %v1173_v40  ;;  %v317_v35 = vsel %vm305_vm0, %v299_v51, %v316_v39  ;;  %v1558_v27 = vmul.u32.u64.low %v319_v55, %v314_v12  ;;  %v1559_v28 = vmul.u32.u64.high %v319_v55, %v314_v12, %v1558_v27 }
  0xc7   :  { %v139_v62 = vsub.s32 4294967266, %v134_v58  ;;  %v1176_v2 = vmin.u32 %v233_v59, %v1543_v53  ;;  %v135_v25 = vsub.s32 32, %v134_v58  ;;  %v318_v26 = vsel %vm304_vm1, %v315_v16, %v317_v35 }
  0xc8   :  { %v310_v32 = vsel %vm304_vm1, %v307_v19, %v309_v20  ;;  %v1563_v36 = vmul.u32.u64.low %v319_v55, %v318_v26  ;;  %v1564_v38 = vmul.u32.u64.high %v319_v55, %v318_v26, %v1563_v36  ;;  %v385_v42 = vadd.s32 1, %v1183_v23 }
  0xc9   :  { %v140_v8 = vadd.s32 127, %v139_v62  ;;  %v235_v18 = vclz %v1176_v2  ;;  %v137_v44 = vshrl.u32 %v119_v24, %v135_v25  ;;  %v136_v22 = vshll.u32 %v1522_v17, %v134_v58  ;;  %v36_v17 = vld [vmem:[#allocation2 + $0x38] sm:$0xff]  ;;  %v38_v62 = vld [vmem:[#allocation2 + $0x48] sm:$0xff] }
  0xca   :  { %v326_v46 = vmul.u32 %v319_v55, %v310_v32  ;;  %v329_v48 = vadd.s32 1, %v1559_v28  ;;  %v375_v33 = vand.u32 2147483647, %v1517_v15  ;;  %vm328_vm3 = vc.u32 %v1564_v38, %v1558_v27  ;;  %v37_v55 = vld [vmem:[#allocation2 + $0x40] sm:$0xff] }
  0xcb   :  { %v1177_v34 = vadd.s32 4294967294, %v235_v18  ;;  %v141_v29 = vshll.u32 %v140_v8, 23  ;;  %vm386_vm4 = vcmp.gt.s32.totalorder %v385_v42, 0  ;;  %v138_v58 = vor.u32 %v137_v44, %v136_v22 }
  0xcc   :  { %v330_v51 = vsel %vm328_vm3, %v329_v48, %v1559_v28  ;;  %v387_v52 = vsel %vm386_vm4, %v385_v42, 0  ;;  %v1576_v63 = vmul.f32 %v1420_v7, %v33_v49  ;;  %vm65_vm5 = vcmp.lt.s32.totalorder %v1423_v9, 0 }
  0xcd   :  { %vm1178_vm2 = vcmp.lt.s32.totalorder %v1177_v34, 0  ;;  %v142_v40 = vor.u32 4788187, %v141_v29  ;;  %v331_v59 = vadd.s32 %v330_v51, %v326_v46  ;;  %v389_v60 = vand.u32 31, %v387_v52 }
  0xce   :  { %v1566_v21 = vsel %vm1178_vm2, 0, %v1177_v34  ;;  %v149_v1 = vsub.s32 4, %v1509_v3  ;;  %v1582_v2 = vand.u32 8388607, %v375_v33  ;;  %v1584_v16 = vmul.f32 %v51_v56, %v34_v50 }
  0xcf   :  { %v243_v31 = vsub.s32 4294967266, %v1566_v21  ;;  %v143_v4 = vand.u32 2147483647, %v142_v40  ;;  %v332_v8 = vadd.s32 536870912, %v331_v59  ;;  %v390_v12 = vsub.s32 32, %v389_v60 }
  0xd0   :  { %v1586_v39 = vmul.f32 %v51_v56, %v35_v57  ;;  %v1588_v18 = vmul.f32 %v51_v56, %v36_v17  ;;  %v1590_v7 = vmul.f32 %v51_v56, %v37_v55  ;;  %v1592_v19 = vmul.f32 %v51_v56, %v38_v62 }
  0xd1   :  { %v244_v6 = vadd.s32 127, %v243_v31  ;;  %v145_v20 = vcvt.s32.f32 %v138_v58  ;;  %v239_v23 = vsub.s32 32, %v1566_v21  ;;  %v1595_v24 = vshrl.u32 %v332_v8, 30 }
  0xd2   :  { %vm1599_vm6 = vcmp.le.f32.partialorder %v63_v11, 0.7853982  ;;  %v1606_v35 = vsel %vm65_vm5, %v149_v1, %v1509_v3  ;;  %v223_v34 = vadd.s32 %v1500_v61, %v1506_v0  ;;  %v383_v26 = vor.u32 8388608, %v1582_v2 }
  0xd3   :  { %v146_v28 = vmul.f32 %v145_v20, %v143_v4  ;;  %v245_v29 = vshll.u32 %v244_v6, 23  ;;  %v334_v32 = vshll.u32 %v1595_v24, 30  ;;  %v393_v36 = vshrl.u32 %v1367_v41, %v390_v12 }
  0xd4   :  { %v396_v11 = vshrl.u32 %v1368_v43, %v390_v12  ;;  %v399_v42 = vshrl.u32 %v1369_v45, %v390_v12  ;;  %v401_v44 = vshll.u32 %v1369_v45, %v389_v60  ;;  %v402_v3 = vshrl.u32 %v1370_v47, %v390_v12 }
  0xd5   :  { %v241_v22 = vshrl.u32 %v223_v34, %v239_v23  ;;  %v1617_v46 = vsub.s32 %v331_v59, %v334_v32  ;;  %v1619_v61 = vshrl.u32 %v387_v52, 5  ;;  %v392_v0 = vshll.u32 %v1366_v37, %v389_v60 }
  0xd6   :  { %v395_v48 = vshll.u32 %v1367_v41, %v389_v60  ;;  %v398_v49 = vshll.u32 %v1368_v43, %v389_v60  ;;  %v403_v40 = vor.u32 %v402_v3, %v401_v44  ;;  %v405_v31 = vshrl.u32 %v1371_v54, %v390_v12 }
  0xd7   :  { %v240_v50 = vshll.u32 %v1543_v53, %v1566_v21  ;;  %v246_v51 = vor.u32 4788187, %v245_v29  ;;  %v337_v56 = vsub.s32 0, %v1617_v46  ;;  %v482_v57 = vand.u32 2139095040, %v1576_v63 }
  0xd8   :  { %v394_v17 = vor.u32 %v393_v36, %v392_v0  ;;  %v397_v52 = vor.u32 %v396_v11, %v395_v48  ;;  %v400_v55 = vor.u32 %v399_v42, %v398_v49  ;;  %v404_v58 = vshll.u32 %v1370_v47, %v389_v60 }
  0xd9   :  { %v147_v59 = vxor.u32 2147483648, %v146_v28  ;;  %v242_v62 = vor.u32 %v241_v22, %v240_v50  ;;  %v1180_v1 = vmin.u32 %v337_v56, %v1617_v46  ;;  %vm410_vm7 = vcmp.lt.s32.totalorder %v1619_v61, 4 }
  0xda   :  { %v152_v53 = vsel %vm1599_vm6, 0, %v1606_v35  ;;  %v406_v21 = vor.u32 %v405_v31, %v404_v58  ;;  %v416_v2 = vsel %vm410_vm7, %v403_v40, 920167782  ;;  %v479_v4 = vand.u32 2147483647, %v1576_v63 }
  0xdb   :  { %vm169_vm8 = vcmp.lt.s32.totalorder %v1426_v10, 0  ;;  %v339_v6 = vclz %v1180_v1  ;;  %vm407_vm9 = vcmp.lt.s32.totalorder %v1619_v61, 1  ;;  %vm409_vm10 = vcmp.lt.s32.totalorder %v1619_v61, 3 }
  0xdc   :  { %v483_v60 = vshrl.u32 %v482_v57, 23  ;;  %v247_v8 = vand.u32 2147483647, %v246_v51  ;;  %v253_v20 = vsub.s32 4, %v1534_v30  ;;  %v415_v23 = vsel %vm407_vm9, %v394_v17, %v397_v52 }
  0xdd   :  { %v417_v35 = vsel %vm409_vm10, %v400_v55, %v416_v2  ;;  %v148_v34 = vsel %vm65_vm5, %v147_v59, %v146_v28  ;;  %v249_v29 = vcvt.s32.f32 %v242_v62  ;;  %v1181_v32 = vadd.s32 4294967294, %v339_v6 }
  0xde   :  { %v391_v36 = vshrl.u32 %v1366_v37, %v390_v12  ;;  %vm1651_vm11 = vcmp.le.f32.partialorder %v167_v14, 0.7853982  ;;  %vm408_vm12 = vcmp.lt.s32.totalorder %v1619_v61, 2  ;;  %v412_v42 = vsel %vm410_vm7, %v400_v55, 2102212464 }
  0xdf   :  { %v419_v44 = vsel %vm407_vm9, %v397_v52, %v400_v55  ;;  %v420_v28 = vsel %vm410_vm7, %v406_v21, 1326507024  ;;  %vm1182_vm13 = vcmp.lt.s32.totalorder %v1181_v32, 0  ;;  %v418_v12 = vsel %vm408_vm12, %v415_v23, %v417_v35 }
  0xe0   :  { %v421_v14 = vsel %vm409_vm10, %v403_v40, %v420_v28  ;;  %v1187_v3 = vadd.s32 4294967169, %v483_v60  ;;  %v250_v22 = vmul.f32 %v249_v29, %v247_v8  ;;  %v342_v0 = vsel %vm1182_vm13, 0, %v1181_v32 }
  0xe1   :  { %v422_v48 = vsel %vm408_vm12, %v419_v44, %v421_v14  ;;  %v423_v49 = vshll.u32 %v383_v26, 8  ;;  %v151_v31 = vsel %vm1599_vm6, %v1423_v9, %v148_v34  ;;  %vm273_vm14 = vcmp.lt.s32.totalorder %v1431_v13, 0 }
  0xe2   :  { %v347_v50 = vsub.s32 4294967266, %v342_v0  ;;  %v411_v51 = vsel %vm407_vm9, %v391_v36, %v394_v17  ;;  %v413_v40 = vsel %vm409_vm10, %v397_v52, %v412_v42  ;;  %v156_v26 = vadd.s32 3, %v152_v53 }
  0xe3   :  { %v1676_v56 = vmul.u32.u64.low %v423_v49, %v422_v48  ;;  %v1677_v57 = vmul.u32.u64.high %v423_v49, %v422_v48, %v1676_v56  ;;  %v1679_v55 = vmul.u32.u64.low %v423_v49, %v418_v12  ;;  %v1680_v58 = vmul.u32.u64.high %v423_v49, %v418_v12, %v1679_v55 }
  0xe4   :  { %v343_v59 = vsub.s32 32, %v342_v0  ;;  %v348_v25 = vadd.s32 127, %v347_v50  ;;  %v489_v62 = vadd.s32 1, %v1187_v3  ;;  %1264 = vcosq.f32 %v151_v31 }
  0xe5   :  { %v251_v1 = vxor.u32 2147483648, %v250_v22  ;;  %v254_v17 = vsel %vm169_vm8, %v253_v20, %v1534_v30  ;;  %v414_v52 = vsel %vm408_vm12, %v411_v51, %v413_v40  ;;  %1266 = vsinq.f32 %v151_v31 }
  0xe6   :  { %v327_v21 = vadd.s32 %v1558_v27, %v1564_v38  ;;  %v349_v2 = vshll.u32 %v348_v25, 23  ;;  %vm490_vm15 = vcmp.gt.s32.totalorder %v489_v62, 0  ;;  %v357_v53 = vsub.s32 4, %v1595_v24 }
  0xe7   :  { %vm432_vm0 = vc.u32 %v1677_v57, %v1679_v55  ;;  %v433_v6 = vadd.s32 1, %v1680_v58  ;;  %v1696_v60 = vand.u32 8388607, %v479_v4  ;;  %v256_v30 = vsel %vm1651_vm11, 0, %v254_v17 }
  0xe8   :  { %v345_v61 = vshrl.u32 %v327_v21, %v343_v59  ;;  %v430_v8 = vmul.u32 %v423_v49, %v414_v52  ;;  %v491_v20 = vsel %vm490_vm15, %v489_v62, 0  ;;  %v252_v27 = vsel %vm169_vm8, %v251_v1, %v250_v22 }
  0xe9   :  { %v350_v38 = vor.u32 4788187, %v349_v2  ;;  %v434_v23 = vsel %vm432_vm0, %v433_v6, %v1680_v58  ;;  %v493_v35 = vand.u32 31, %v491_v20  ;;  %v1703_v34 = vand.u32 3, %v156_v26 }
  0xea   :  { %vm1707_vm1 = vcmp.le.f32.partialorder %v271_v5, 0.7853982  ;;  %v344_v32 = vshll.u32 %v1617_v46, %v342_v0  ;;  %v435_v36 = vadd.s32 %v434_v23, %v430_v8  ;;  %v1712_v42 = vadd.s32 3, %v256_v30 }
  0xeb   :  { %v1717_v44 = vsel %vm273_vm14, %v357_v53, %v1595_v24  ;;  %v487_v28 = vor.u32 8388608, %v1696_v60  ;;  %v494_v12 = vsub.s32 32, %v493_v35  ;;  %v255_v5 = vsel %vm1651_vm11, %v1426_v10, %v252_v27 }
  0xec   :  { %v346_v14 = vor.u32 %v345_v61, %v344_v32  ;;  %v436_v3 = vadd.s32 536870912, %v435_v36  ;;  %v1723_v22 = vshrl.u32 %v491_v20, 5  ;;  %v351_v46 = vand.u32 2147483647, %v350_v38 }
  0xed   :  { %v497_v0 = vshrl.u32 %v1367_v41, %v494_v12  ;;  %v500_v48 = vshrl.u32 %v1368_v43, %v494_v12  ;;  %v503_v49 = vshrl.u32 %v1369_v45, %v494_v12  ;;  %v496_v31 = vshll.u32 %v1366_v37, %v493_v35 }
  0xee   :  { %v1728_v24 = vshrl.u32 %v436_v3, 30  ;;  %v499_v50 = vshll.u32 %v1367_v41, %v493_v35  ;;  %v506_v11 = vshrl.u32 %v1370_v47, %v494_v12  ;;  %v1265_v51 = vpop.eup %1264  ;;  %v502_v40 = vshll.u32 %v1368_v43, %v493_v35 }
  0xef   :  { %v505_v56 = vshll.u32 %v1369_v45, %v493_v35  ;;  %v508_v58 = vshll.u32 %v1370_v47, %v493_v35  ;;  %v509_v26 = vshrl.u32 %v1371_v54, %v494_v12  ;;  %v1267_v59 = vpop.eup %1266  ;;  %1268 = vcosq.f32 %v255_v5 }
  0xf0   :  { %v438_v25 = vshll.u32 %v1728_v24, 30  ;;  %v498_v62 = vor.u32 %v497_v0, %v496_v31  ;;  %v501_v1 = vor.u32 %v500_v48, %v499_v50  ;;  %v353_v17 = vcvt.s32.f32 %v346_v14 }
  0xf1   :  { %v504_v52 = vor.u32 %v503_v49, %v502_v40  ;;  %v507_v21 = vor.u32 %v506_v11, %v505_v56  ;;  %v510_v2 = vor.u32 %v509_v26, %v508_v58  ;;  %vm159_vm2 = vcmp.eq.s32.totalorder %v1703_v34, 0 }
  0xf2   :  { %vm162_vm3 = vcmp.eq.s32.totalorder %v1703_v34, 2  ;;  %v163_v53 = vxor.u32 2147483648, %v1265_v51  ;;  %1270 = vsinq.f32 %v255_v5  ;;  %v360_v6 = vsel %vm1707_vm1, 0, %v1717_v44 }
  0xf3   :  { %v1743_v60 = vsub.s32 %v435_v36, %v438_v25  ;;  %v160_v30 = vxor.u32 2147483648, %v1267_v59  ;;  %v354_v61 = vmul.f32 %v353_v17, %v351_v46  ;;  %vm511_vm4 = vcmp.lt.s32.totalorder %v1723_v22, 1 }
  0xf4   :  { %v586_v8 = vand.u32 2139095040, %v1584_v16  ;;  %vm513_vm5 = vcmp.lt.s32.totalorder %v1723_v22, 3  ;;  %vm514_vm6 = vcmp.lt.s32.totalorder %v1723_v22, 4  ;;  %v519_v27 = vsel %vm511_vm4, %v498_v62, %v501_v1 }
  0xf5   :  { %v441_v20 = vsub.s32 0, %v1743_v60  ;;  %v495_v38 = vshrl.u32 %v1366_v37, %v494_v12  ;;  %v516_v23 = vsel %vm514_vm6, %v504_v52, 2102212464  ;;  %v520_v35 = vsel %vm514_vm6, %v507_v21, 920167782 }
  0xf6   :  { %v524_v32 = vsel %vm514_vm6, %v510_v2, 1326507024  ;;  %vm512_vm7 = vcmp.lt.s32.totalorder %v1723_v22, 2  ;;  %v521_v44 = vsel %vm513_vm5, %v504_v52, %v520_v35  ;;  %v523_v5 = vsel %vm511_vm4, %v501_v1, %v504_v52 }
  0xf7   :  { %v1184_v36 = vmin.u32 %v441_v20, %v1743_v60  ;;  %v522_v14 = vsel %vm512_vm7, %v519_v27, %v521_v44  ;;  %v525_v3 = vsel %vm513_vm5, %v507_v21, %v524_v32  ;;  %v527_v12 = vshll.u32 %v487_v28, 8 }
  0xf8   :  { %v587_v46 = vshrl.u32 %v586_v8, 23  ;;  %vm155_vm8 = vweird.f32 %v1423_v9  ;;  %v355_v0 = vxor.u32 2147483648, %v354_v61  ;;  %v515_v49 = vsel %vm511_vm4, %v495_v38, %v498_v62 }
  0xf9   :  { %v443_v48 = vclz %v1184_v36  ;;  %v517_v31 = vsel %vm513_vm5, %v501_v1, %v516_v23  ;;  %v526_v50 = vsel %vm512_vm7, %v523_v5, %v525_v3  ;;  %v1774_v28 = vpop.eup %1268  ;;  %v364_v58 = vadd.s32 3, %v360_v6 }
  0xfa   :  { %v1770_v11 = vmul.u32.u64.low %v527_v12, %v522_v14  ;;  %v1771_v40 = vmul.u32.u64.high %v527_v12, %v522_v14, %v1770_v11  ;;  %v1191_v56 = vadd.s32 4294967169, %v587_v46  ;;  %v161_v62 = vsel %vm159_vm2, %v1265_v51, %v160_v30 }
  0xfb   :  { %v1185_v26 = vadd.s32 4294967294, %v443_v48  ;;  %v1776_v25 = vmul.u32.u64.low %v527_v12, %v526_v50  ;;  %v1777_v17 = vmul.u32.u64.high %v527_v12, %v526_v50, %v1776_v25  ;;  %v164_v1 = vsel %vm162_vm3, %v163_v53, %v1267_v59 }
  0xfc   :  { %v1784_v52 = vand.u32 3, %v1712_v42  ;;  %vm1788_vm9 = vcmp.le.f32.partialorder %v375_v33, 0.7853982  ;;  %v593_v2 = vadd.s32 1, %v1191_v56  ;;  %v1271_v6 = vpop.eup %1270  ;;  %vm158_vm10 = vcmp.lt.s32.totalorder %v1703_v34, 2 }
  0xfd   :  { %v356_v8 = vsel %vm273_vm14, %v355_v0, %v354_v61  ;;  %vm1186_vm11 = vcmp.lt.s32.totalorder %v1185_v26, 0  ;;  %v518_v51 = vsel %vm512_vm7, %v515_v49, %v517_v31  ;;  %v461_v42 = vsub.s32 4, %v1728_v24 }
  0xfe   :  { %v446_v59 = vsel %vm1186_vm11, 0, %v1185_v26  ;;  %v537_v53 = vadd.s32 1, %v1771_v40  ;;  %vm594_vm12 = vcmp.gt.s32.totalorder %v593_v2, 0  ;;  %v165_v33 = vsel %vm158_vm10, %v161_v62, %v164_v1 }
  0xff   :  { %v1799_v30 = vand.u32 3, %v364_v58  ;;  %vm377_vm13 = vcmp.lt.s32.totalorder %v1517_v15, 0  ;;  %v451_v20 = vsub.s32 4294967266, %v446_v59  ;;  %vm266_vm15 = vcmp.eq.s32.totalorder %v1784_v52, 2 }
 0x100   :  { %v359_v34 = vsel %vm1707_vm1, %v1431_v13, %v356_v8  ;;  %v534_v22 = vmul.u32 %v527_v12, %v518_v51  ;;  %vm536_vm14 = vc.u32 %v1777_v17, %v1770_v11  ;;  %v595_v61 = vsel %vm594_vm12, %v593_v2, 0 }
 0x101   :  { %v447_v27 = vsub.s32 32, %v446_v59  ;;  %v452_v38 = vadd.s32 127, %v451_v20  ;;  %v538_v23 = vsel %vm536_vm14, %v537_v53, %v1771_v40  ;;  %v583_v35 = vand.u32 2147483647, %v1584_v16 }
 0x102   :  { %v1812_v32 = vsel %vm155_vm8, nan, %v165_v33  ;;  %vm263_vm0 = vcmp.eq.s32.totalorder %v1784_v52, 0  ;;  %v462_v29 = vsel %vm377_vm13, %v461_v42, %v1728_v24  ;;  %v539_v36 = vadd.s32 %v538_v23, %v534_v22 }
 0x103   :  { %v597_v44 = vand.u32 31, %v595_v61  ;;  %v264_v5 = vxor.u32 2147483648, %v1271_v6  ;;  %v267_v14 = vxor.u32 2147483648, %v1774_v28  ;;  %1272 = vcosq.f32 %v359_v34 }
 0x104   :  { %v431_v3 = vadd.s32 %v1679_v55, %v1677_v57  ;;  %1274 = vsinq.f32 %v359_v34  ;;  %v453_v12 = vshll.u32 %v452_v38, 23  ;;  %v540_v9 = vadd.s32 536870912, %v539_v36 }
 0x105   :  { %v598_v46 = vsub.s32 32, %v597_v44  ;;  %v448_v0 = vshll.u32 %v1743_v60, %v446_v59  ;;  %v464_v49 = vsel %vm1788_vm9, 0, %v462_v29  ;;  %v590_v24 = vand.u32 8388607, %v583_v35 }
 0x106   :  { %v449_v48 = vshrl.u32 %v431_v3, %v447_v27  ;;  %v1826_v31 = vshrl.u32 %v540_v9, 30  ;;  %v1828_v50 = vshrl.u32 %v595_v61, 5  ;;  %v600_v55 = vshll.u32 %v1366_v37, %v597_v44 }
 0x107   :  { %v601_v40 = vshrl.u32 %v1367_v41, %v598_v46  ;;  %v604_v57 = vshrl.u32 %v1368_v43, %v598_v46  ;;  %v607_v56 = vshrl.u32 %v1369_v45, %v598_v46  ;;  %v609_v60 = vshll.u32 %v1369_v45, %v597_v44 }
 0x108   :  { %v610_v58 = vshrl.u32 %v1370_v47, %v598_v46  ;;  %v454_v26 = vor.u32 4788187, %v453_v12  ;;  %v542_v25 = vshll.u32 %v1826_v31, 30  ;;  %v603_v62 = vshll.u32 %v1367_v41, %v597_v44 }
 0x109   :  { %v606_v1 = vshll.u32 %v1368_v43, %v597_v44  ;;  %v1841_v2 = vsel %vm266_vm15, %v267_v14, %v1271_v6  ;;  %v450_v8 = vor.u32 %v449_v48, %v448_v0  ;;  %v613_v59 = vshrl.u32 %v1371_v54, %v598_v46 }
 0x10a   :  { %v611_v51 = vor.u32 %v610_v58, %v609_v60  ;;  %v1844_v42 = vsub.s32 %v539_v36, %v542_v25  ;;  %v602_v53 = vor.u32 %v601_v40, %v600_v55  ;;  %v605_v33 = vor.u32 %v604_v57, %v603_v62 }
 0x10b   :  { %v608_v20 = vor.u32 %v607_v56, %v606_v1  ;;  %v1849_v34 = vsel %vm263_vm0, %v1774_v28, %v264_v5  ;;  %v1851_v22 = vadd.s32 3, %v464_v49  ;;  %v591_v61 = vor.u32 8388608, %v590_v24 }
 0x10c   :  { %v612_v6 = vshll.u32 %v1370_v47, %v597_v44  ;;  %v455_v27 = vand.u32 2147483647, %v454_v26  ;;  %v545_v38 = vsub.s32 0, %v1844_v42  ;;  %vm618_vm1 = vcmp.lt.s32.totalorder %v1828_v50, 4 }
 0x10d   :  { %v687_v23 = vand.u32 2147483647, %v1586_v39  ;;  %v1857_v29 = vpop.eup %1272  ;;  %v457_v36 = vcvt.s32.f32 %v450_v8  ;;  %vm615_vm2 = vcmp.lt.s32.totalorder %v1828_v50, 1  ;;  %v624_v28 = vsel %vm618_vm1, %v611_v51, 920167782 }
 0x10e   :  { %v614_v14 = vor.u32 %v613_v59, %v612_v6  ;;  %v1275_v5 = vpop.eup %1274  ;;  %vm481_vm3 = vcmp.lt.s32.totalorder %v1576_v63, 0  ;;  %v1188_v44 = vmin.u32 %v545_v38, %v1844_v42  ;;  %vm617_vm4 = vcmp.lt.s32.totalorder %v1828_v50, 3 }
 0x10f   :  { %v620_v3 = vsel %vm618_vm1, %v608_v20, 2102212464  ;;  %v623_v12 = vsel %vm615_vm2, %v602_v53, %v605_v33  ;;  %v599_v9 = vshrl.u32 %v1366_v37, %v598_v46  ;;  %v625_v0 = vsel %vm617_vm4, %v608_v20, %v624_v28 }
 0x110   :  { %v631_v48 = vshll.u32 %v591_v61, 8  ;;  %v690_v49 = vand.u32 2139095040, %v1586_v39  ;;  %v458_v24 = vmul.f32 %v457_v36, %v455_v27  ;;  %v547_v40 = vclz %v1188_v44 }
 0x111   :  { %vm616_vm5 = vcmp.lt.s32.totalorder %v1828_v50, 2  ;;  %v627_v57 = vsel %vm615_vm2, %v605_v33, %v608_v20  ;;  %vm262_vm6 = vcmp.lt.s32.totalorder %v1784_v52, 2  ;;  %v619_v55 = vsel %vm615_vm2, %v599_v9, %v602_v53 }
 0x112   :  { %v621_v46 = vsel %vm617_vm4, %v605_v33, %v620_v3  ;;  %v626_v56 = vsel %vm616_vm5, %v623_v12, %v625_v0  ;;  %v628_v60 = vsel %vm618_vm1, %v614_v14, 1326507024  ;;  %vm367_vm7 = vcmp.eq.s32.totalorder %v1799_v30, 0 }
 0x113   :  { %vm370_vm8 = vcmp.eq.s32.totalorder %v1799_v30, 2  ;;  %vm1889_vm10 = vcmp.le.f32.partialorder %v479_v4, 0.7853982  ;;  %v1189_v26 = vadd.s32 4294967294, %v547_v40  ;;  %v629_v25 = vsel %vm617_vm4, %v611_v51, %v628_v60 }
 0x114   :  { %v1895_v62 = vmul.u32.u64.low %v631_v48, %v626_v56  ;;  %v1896_v1 = vmul.u32.u64.high %v631_v48, %v626_v56, %v1895_v62  ;;  %v371_v8 = vxor.u32 2147483648, %v1857_v29  ;;  %v565_v59 = vsub.s32 4, %v1826_v31 }
 0x115   :  { %v630_v53 = vsel %vm616_vm5, %v627_v57, %v629_v25  ;;  %v691_v33 = vshrl.u32 %v690_v49, 23  ;;  %vm259_vm11 = vweird.f32 %v1426_v10  ;;  %vm1190_vm12 = vcmp.lt.s32.totalorder %v1189_v26, 0 }
 0x116   :  { %v622_v4 = vsel %vm616_vm5, %v619_v55, %v621_v46  ;;  %v1906_v20 = vmul.u32.u64.low %v631_v48, %v630_v53  ;;  %v1907_v51 = vmul.u32.u64.high %v631_v48, %v630_v53, %v1906_v20  ;;  %v368_v61 = vxor.u32 2147483648, %v1275_v5 }
 0x117   :  { %v459_v6 = vxor.u32 2147483648, %v458_v24  ;;  %v550_v27 = vsel %vm1190_vm12, 0, %v1189_v26  ;;  %v1195_v38 = vadd.s32 4294967169, %v691_v33  ;;  %vm366_vm15 = vcmp.lt.s32.totalorder %v1799_v30, 2 }
 0x118   :  { %v535_v36 = vadd.s32 %v1770_v11, %v1777_v17  ;;  %v551_v14 = vsub.s32 32, %v550_v27  ;;  %v555_v28 = vsub.s32 4294967266, %v550_v27  ;;  %v641_v44 = vadd.s32 1, %v1896_v1 }
 0x119   :  { %v566_v50 = vsel %vm481_vm3, %v565_v59, %v1826_v31  ;;  %v638_v3 = vmul.u32 %v631_v48, %v622_v4  ;;  %v694_v12 = vand.u32 8388607, %v687_v23  ;;  %v697_v9 = vadd.s32 1, %v1195_v38 }
 0x11a   :  { %v552_v0 = vshll.u32 %v1844_v42, %v550_v27  ;;  %v553_v49 = vshrl.u32 %v535_v36, %v551_v14  ;;  %v556_v40 = vadd.s32 127, %v555_v28  ;;  %vm640_vm14 = vc.u32 %v1907_v51, %v1895_v62 }
 0x11b   :  { %v460_v11 = vsel %vm377_vm13, %v459_v6, %v458_v24  ;;  %v642_v17 = vsel %vm640_vm14, %v641_v44, %v1896_v1  ;;  %vm698_vm0 = vcmp.gt.s32.totalorder %v697_v9, 0  ;;  %v794_v31 = vand.u32 2139095040, %v1588_v18 }
 0x11c   :  { %v269_v48 = vsel %vm262_vm6, %v1849_v34, %v1841_v2  ;;  %v554_v57 = vor.u32 %v553_v49, %v552_v0  ;;  %v557_v42 = vshll.u32 %v556_v40, 23  ;;  %v643_v55 = vadd.s32 %v642_v17, %v638_v3 }
 0x11d   :  { %v369_v46 = vsel %vm367_vm7, %v1857_v29, %v368_v61  ;;  %v372_v24 = vsel %vm370_vm8, %v371_v8, %v1275_v5  ;;  %v568_v56 = vsel %vm1889_vm10, 0, %v566_v50  ;;  %v699_v60 = vsel %vm698_vm0, %v697_v9, 0 }
 0x11e   :  { %v463_v26 = vsel %vm1788_vm9, %v1517_v15, %v460_v11  ;;  %v558_v52 = vor.u32 4788187, %v557_v42  ;;  %v644_v2 = vadd.s32 536870912, %v643_v55  ;;  %v695_v34 = vor.u32 8388608, %v694_v12 }
 0x11f   :  { %v1941_v25 = vsel %vm259_vm11, nan, %v269_v48  ;;  %v1944_v29 = vand.u32 3, %v1851_v22  ;;  %v701_v1 = vand.u32 31, %v699_v60  ;;  %v795_v5 = vshrl.u32 %v794_v31, 23 }
 0x120   :  { %v559_v8 = vand.u32 2147483647, %v558_v52  ;;  %v561_v59 = vcvt.s32.f32 %v554_v57  ;;  %v1946_v53 = vshrl.u32 %v644_v2, 30  ;;  %v791_v33 = vand.u32 2147483647, %v1588_v18 }
 0x121   :  { %v1951_v21 = vsel %vm366_vm15, %v369_v46, %v372_v24  ;;  %1276 = vcosq.f32 %v463_v26  ;;  %v1953_v4 = vadd.s32 3, %v568_v56  ;;  %v702_v10 = vsub.s32 32, %v701_v1 }
 0x122   :  { %1278 = vsinq.f32 %v463_v26  ;;  %v562_v20 = vmul.f32 %v561_v59, %v559_v8  ;;  %v646_v22 = vshll.u32 %v1946_v53, 30  ;;  %v1956_v61 = vshll.u32 %v695_v34, 8 }
 0x123   :  { %v705_v6 = vshrl.u32 %v1367_v41, %v702_v10  ;;  %v708_v27 = vshrl.u32 %v1368_v43, %v702_v10  ;;  %v711_v38 = vshrl.u32 %v1369_v45, %v702_v10  ;;  %v1199_v36 = vadd.s32 4294967169, %v795_v5 }
 0x124   :  { %v563_v30 = vxor.u32 2147483648, %v562_v20  ;;  %v1961_v14 = vsub.s32 %v643_v55, %v646_v22  ;;  %v704_v28 = vshll.u32 %v1366_v37, %v701_v1  ;;  %v707_v44 = vshll.u32 %v1367_v41, %v701_v1 }
 0x125   :  { %v1965_v50 = vshrl.u32 %v699_v60, 5  ;;  %v710_v3 = vshll.u32 %v1368_v43, %v701_v1  ;;  %v713_v12 = vshll.u32 %v1369_v45, %v701_v1  ;;  %v1971_v9 = vand.u32 8388607, %v791_v33 }
 0x126   :  { %v649_v0 = vsub.s32 0, %v1961_v14  ;;  %v706_v49 = vor.u32 %v705_v6, %v704_v28  ;;  %v709_v40 = vor.u32 %v708_v27, %v707_v44  ;;  %v714_v11 = vshrl.u32 %v1370_v47, %v702_v10 }
 0x127   :  { %v564_v17 = vsel %vm481_vm3, %v563_v30, %v562_v20  ;;  %v712_v31 = vor.u32 %v711_v38, %v710_v3  ;;  %v716_v48 = vshll.u32 %v1370_v47, %v701_v1  ;;  %v717_v57 = vshrl.u32 %v1371_v54, %v702_v10 }
 0x128   :  { %v639_v42 = vadd.s32 %v1895_v62, %v1907_v51  ;;  %v1192_v55 = vmin.u32 %v649_v0, %v1961_v14  ;;  %v715_v46 = vor.u32 %v714_v11, %v713_v12  ;;  %v801_v24 = vadd.s32 1, %v1199_v36 }
 0x129   :  { %v669_v56 = vsub.s32 4, %v1946_v53  ;;  %v703_v60 = vshrl.u32 %v1366_v37, %v702_v10  ;;  %v718_v26 = vor.u32 %v717_v57, %v716_v48  ;;  %v799_v52 = vor.u32 8388608, %v1971_v9 }
 0x12a   :  { %v567_v2 = vsel %vm1889_vm10, %v1576_v63, %v564_v17  ;;  %vm585_vm9 = vcmp.lt.s32.totalorder %v1584_v16, 0  ;;  %v651_v34 = vclz %v1192_v55  ;;  %vm719_vm13 = vcmp.lt.s32.totalorder %v1965_v50, 1 }
 0x12b   :  { %vm720_vm1 = vcmp.lt.s32.totalorder %v1965_v50, 2  ;;  %v1277_v62 = vpop.eup %1276  ;;  %vm363_vm2 = vweird.f32 %v1431_v13  ;;  %vm721_vm3 = vcmp.lt.s32.totalorder %v1965_v50, 3  ;;  %vm722_vm4 = vcmp.lt.s32.totalorder %v1965_v50, 4 }
 0x12c   :  { %v727_v51 = vsel %vm719_vm13, %v706_v49, %v709_v40  ;;  %v731_v58 = vsel %vm719_vm13, %v709_v40, %v712_v31  ;;  %v1279_v1 = vpop.eup %1278  ;;  %vm474_vm5 = vcmp.eq.s32.totalorder %v1944_v29, 2  ;;  %v1193_v5 = vadd.s32 4294967294, %v651_v34 }
 0x12d   :  { %v724_v8 = vsel %vm722_vm4, %v712_v31, 2102212464  ;;  %v728_v59 = vsel %vm722_vm4, %v715_v46, 920167782  ;;  %vm802_vm6 = vcmp.gt.s32.totalorder %v801_v24, 0  ;;  %vm471_vm7 = vcmp.eq.s32.totalorder %v1944_v29, 0 }
 0x12e   :  { %vm2002_vm8 = vcmp.le.f32.partialorder %v583_v35, 0.7853982  ;;  %v723_v20 = vsel %vm719_vm13, %v703_v60, %v706_v49  ;;  %v725_v22 = vsel %vm721_vm3, %v709_v40, %v724_v8  ;;  %v729_v6 = vsel %vm721_vm3, %v712_v31, %v728_v59 }
 0x12f   :  { %v732_v27 = vsel %vm722_vm4, %v718_v26, 1326507024  ;;  %vm1194_vm10 = vcmp.lt.s32.totalorder %v1193_v5, 0  ;;  %v730_v38 = vsel %vm720_vm1, %v727_v51, %v729_v6  ;;  %v803_v36 = vsel %vm802_vm6, %v801_v24, 0 }
 0x130   :  { %v733_v35 = vsel %vm721_vm3, %v715_v46, %v732_v27  ;;  %v654_v30 = vsel %vm1194_vm10, 0, %v1193_v5  ;;  %v2019_v44 = vmul.u32.u64.low %v1956_v61, %v730_v38  ;;  %v2020_v3 = vmul.u32.u64.high %v1956_v61, %v730_v38, %v2019_v44 }
 0x131   :  { %v734_v28 = vsel %vm720_vm1, %v731_v58, %v733_v35  ;;  %v475_v12 = vxor.u32 2147483648, %v1277_v62  ;;  %1280 = vcosq.f32 %v567_v2  ;;  %v655_v9 = vsub.s32 32, %v654_v30 }
 0x132   :  { %v659_v0 = vsub.s32 4294967266, %v654_v30  ;;  %v472_v49 = vxor.u32 2147483648, %v1279_v1  ;;  %v2024_v40 = vmul.u32.u64.low %v1956_v61, %v734_v28  ;;  %v2025_v11 = vmul.u32.u64.high %v1956_v61, %v734_v28, %v2024_v40 }
 0x133   :  { %v805_v17 = vand.u32 31, %v803_v36  ;;  %vm470_vm11 = vcmp.lt.s32.totalorder %v1944_v29, 2  ;;  %v656_v31 = vshll.u32 %v1961_v14, %v654_v30  ;;  %v657_v48 = vshrl.u32 %v639_v42, %v655_v9 }
 0x134   :  { %v660_v57 = vadd.s32 127, %v659_v0  ;;  %v726_v55 = vsel %vm720_vm1, %v723_v20, %v725_v22  ;;  %1282 = vsinq.f32 %v567_v2  ;;  %v670_v46 = vsel %vm585_vm9, %v669_v56, %v1946_v53 }
 0x135   :  { %v745_v24 = vadd.s32 1, %v2020_v3  ;;  %v2035_v60 = vsub.s32 32, %v805_v17  ;;  %v2040_v26 = vsel %vm363_vm2, nan, %v1951_v21  ;;  %v2043_v14 = vand.u32 3, %v1953_v4 }
 0x136   :  { %v658_v42 = vor.u32 %v657_v48, %v656_v31  ;;  %v661_v50 = vshll.u32 %v660_v57, 23  ;;  %v476_v2 = vsel %vm474_vm5, %v475_v12, %v1279_v1  ;;  %v742_v34 = vmul.u32 %v1956_v61, %v726_v55 }
 0x137   :  { %vm744_vm12 = vc.u32 %v2025_v11, %v2019_v44  ;;  %v2050_v53 = vshll.u32 %v799_v52, 8  ;;  %v473_v13 = vsel %vm471_vm7, %v1277_v62, %v472_v49  ;;  %v672_v4 = vsel %vm2002_vm8, 0, %v670_v46 }
 0x138   :  { %v662_v21 = vor.u32 4788187, %v661_v50  ;;  %v746_v56 = vsel %vm744_vm12, %v745_v24, %v2020_v3  ;;  %v808_v58 = vshll.u32 %v1366_v37, %v805_v17  ;;  %v809_v61 = vshrl.u32 %v1367_v41, %v2035_v60 }
 0x139   :  { %v747_v51 = vadd.s32 %v746_v56, %v742_v34  ;;  %v812_v1 = vshrl.u32 %v1368_v43, %v2035_v60  ;;  %v665_v5 = vcvt.s32.f32 %v658_v42  ;;  %v811_v8 = vshll.u32 %v1367_v41, %v805_v17 }
 0x13a   :  { %v663_v52 = vand.u32 2147483647, %v662_v21  ;;  %v815_v62 = vshrl.u32 %v1369_v45, %v2035_v60  ;;  %v2065_v20 = vshrl.u32 %v803_v36, 5  ;;  %v810_v22 = vor.u32 %v809_v61, %v808_v58 }
 0x13b   :  { %v748_v59 = vadd.s32 536870912, %v747_v51  ;;  %v814_v6 = vshll.u32 %v1368_v43, %v805_v17  ;;  %v1281_v27 = vpop.eup %1280  ;;  %vm689_vm15 = vcmp.lt.s32.totalorder %v1586_v39, 0  ;;  %v813_v35 = vor.u32 %v812_v1, %v811_v8 }
 0x13c   :  { %v666_v38 = vmul.f32 %v665_v5, %v663_v52  ;;  %v817_v30 = vshll.u32 %v1369_v45, %v805_v17  ;;  %v818_v28 = vshrl.u32 %v1370_v47, %v2035_v60  ;;  %v477_v3 = vsel %vm470_vm11, %v473_v13, %v476_v2 }
 0x13d   :  { %vm578_vm14 = vcmp.eq.s32.totalorder %v2043_v14, 2  ;;  %v676_v36 = vadd.s32 3, %v672_v4  ;;  %v749_v12 = vshrl.u32 %v748_v59, 30  ;;  %v821_v9 = vshrl.u32 %v1371_v54, %v2035_v60 }
 0x13e   :  { %vm575_vm0 = vcmp.eq.s32.totalorder %v2043_v14, 0  ;;  %v667_v0 = vxor.u32 2147483648, %v666_v38  ;;  %v816_v49 = vor.u32 %v815_v62, %v814_v6  ;;  %v819_v40 = vor.u32 %v818_v28, %v817_v30  ;;  %v1283_v48 = vpop.eup %1282 }
 0x13f   :  { %v820_v31 = vshll.u32 %v1370_v47, %v805_v17  ;;  %v579_v57 = vxor.u32 2147483648, %v1281_v27  ;;  %vm2081_vm13 = vcmp.le.f32.partialorder %v687_v23, 0.7853982  ;;  %v750_v55 = vshll.u32 %v749_v12, 30 }
 0x140   :  { %vm823_vm1 = vcmp.lt.s32.totalorder %v2065_v20, 1  ;;  %vm826_vm2 = vcmp.lt.s32.totalorder %v2065_v20, 4  ;;  %vm467_vm3 = vweird.f32 %v1517_v15  ;;  %v668_v46 = vsel %vm585_vm9, %v667_v0, %v666_v38 }
 0x141   :  { %v822_v24 = vor.u32 %v821_v9, %v820_v31  ;;  %v831_v17 = vsel %vm823_vm1, %v810_v22, %v813_v35  ;;  %v832_v23 = vsel %vm826_vm2, %v819_v40, 920167782  ;;  %v671_v42 = vsel %vm2002_vm8, %v1584_v16, %v668_v46 }
 0x142   :  { %v2097_v50 = vsub.s32 %v747_v51, %v750_v55  ;;  %v773_v2 = vsub.s32 4, %v749_v12  ;;  %vm825_vm4 = vcmp.lt.s32.totalorder %v2065_v20, 3  ;;  %v576_v34 = vxor.u32 2147483648, %v1283_v48 }
 0x143   :  { %1284 = vcosq.f32 %v671_v42  ;;  %vm824_vm9 = vcmp.lt.s32.totalorder %v2065_v20, 2  ;;  %v833_v13 = vsel %vm825_vm4, %v816_v49, %v832_v23  ;;  %v828_v4 = vsel %vm826_vm2, %v816_v49, 2102212464 }
 0x144   :  { %1286 = vsinq.f32 %v671_v42  ;;  %v753_v21 = vsub.s32 0, %v2097_v50  ;;  %v834_v10 = vsel %vm824_vm9, %v831_v17, %v833_v13  ;;  %v835_v56 = vsel %vm823_vm1, %v813_v35, %v816_v49 }
 0x145   :  { %v836_v51 = vsel %vm826_vm2, %v822_v24, 1326507024  ;;  %v2113_v58 = vmul.u32.u64.low %v2050_v53, %v834_v10  ;;  %v2114_v61 = vmul.u32.u64.high %v2050_v53, %v834_v10, %v2113_v58  ;;  %v774_v52 = vsel %vm689_vm15, %v773_v2, %v749_v12 }
 0x146   :  { %v1196_v1 = vmin.u32 %v753_v21, %v2097_v50  ;;  %v807_v5 = vshrl.u32 %v1366_v37, %v2035_v60  ;;  %v837_v8 = vsel %vm825_vm4, %v819_v40, %v836_v51  ;;  %v580_v62 = vsel %vm578_vm14, %v579_v57, %v1283_v48 }
 0x147   :  { %v838_v59 = vsel %vm824_vm9, %v835_v56, %v837_v8  ;;  %v895_v6 = vand.u32 2147483647, %v1590_v7  ;;  %v898_v38 = vand.u32 2139095040, %v1590_v7  ;;  %v577_v30 = vsel %vm575_vm0, %v1281_v27, %v576_v34 }
 0x148   :  { %v755_v28 = vclz %v1196_v1  ;;  %v827_v60 = vsel %vm823_vm1, %v807_v5, %v810_v22  ;;  %v829_v12 = vsel %vm825_vm4, %v813_v35, %v828_v4  ;;  %v776_v9 = vsel %vm2081_vm13, 0, %v774_v52 }
 0x149   :  { %v2139_v0 = vmul.u32.u64.low %v2050_v53, %v838_v59  ;;  %v2140_v49 = vmul.u32.u64.high %v2050_v53, %v838_v59, %v2139_v0  ;;  %v899_v40 = vshrl.u32 %v898_v38, 23  ;;  %v2144_v31 = vsel %vm467_vm3, nan, %v477_v3 }
 0x14a   :  { %vm571_vm5 = vweird.f32 %v1576_v63  ;;  %vm574_vm6 = vcmp.lt.s32.totalorder %v2043_v14, 2  ;;  %v677_v22 = vand.u32 3, %v676_v36  ;;  %v1197_v27 = vadd.s32 4294967294, %v755_v28 }
 0x14b   :  { %v743_v35 = vadd.s32 %v2019_v44, %v2025_v11  ;;  %v830_v48 = vsel %vm824_vm9, %v827_v60, %v829_v12  ;;  %v849_v57 = vadd.s32 1, %v2114_v61  ;;  %v1203_v55 = vadd.s32 4294967169, %v899_v40 }
 0x14c   :  { %v581_v46 = vsel %vm574_vm6, %v577_v30, %v580_v62  ;;  %vm1198_vm7 = vcmp.lt.s32.totalorder %v1197_v27, 0  ;;  %v780_v15 = vadd.s32 3, %v776_v9  ;;  %v902_v3 = vand.u32 8388607, %v895_v6 }
 0x14d   :  { %v1285_v24 = vpop.eup %1284  ;;  %v758_v17 = vsel %vm1198_vm7, 0, %v1197_v27  ;;  %vm848_vm8 = vc.u32 %v2140_v49, %v2113_v58  ;;  %v905_v14 = vadd.s32 1, %v1203_v55  ;;  %v1002_v44 = vand.u32 2139095040, %v1592_v19 }
 0x14e   :  { %v1287_v11 = vpop.eup %1286  ;;  %vm678_vm10 = vcmp.lt.s32.totalorder %v677_v22, 2  ;;  %v759_v20 = vsub.s32 32, %v758_v17  ;;  %v763_v36 = vsub.s32 4294967266, %v758_v17  ;;  %v846_v23 = vmul.u32 %v2050_v53, %v830_v48 }
 0x14f   :  { %v999_v42 = vand.u32 2147483647, %v1592_v19  ;;  %v683_v2 = vxor.u32 2147483648, %v1285_v24  ;;  %v760_v34 = vshll.u32 %v2097_v50, %v758_v17  ;;  %v850_v13 = vsel %vm848_vm8, %v849_v57, %v2114_v61 }
 0x150   :  { %vm906_vm11 = vcmp.gt.s32.totalorder %v905_v14, 0  ;;  %v680_v21 = vxor.u32 2147483648, %v1287_v11  ;;  %v761_v4 = vshrl.u32 %v743_v35, %v759_v20  ;;  %v764_v10 = vadd.s32 127, %v763_v36 }
 0x151   :  { %v851_v56 = vadd.s32 %v850_v13, %v846_v23  ;;  %vm679_vm12 = vcmp.eq.s32.totalorder %v677_v22, 0  ;;  %v903_v51 = vor.u32 8388608, %v902_v3  ;;  %v907_v1 = vsel %vm906_vm11, %v905_v14, 0 }
 0x152   :  { %v1003_v52 = vshrl.u32 %v1002_v44, 23  ;;  %v762_v5 = vor.u32 %v761_v4, %v760_v34  ;;  %v765_v8 = vshll.u32 %v764_v10, 23  ;;  %v2164_v53 = vand.u32 8388607, %v999_v42 }
 0x153   :  { %v852_v62 = vadd.s32 536870912, %v851_v56  ;;  %v2168_v50 = vsel %vm571_vm5, nan, %v581_v46  ;;  %vm682_vm14 = vcmp.eq.s32.totalorder %v677_v22, 2  ;;  %v2170_v61 = vand.u32 3, %v780_v15 }
 0x154   :  { %v909_v59 = vand.u32 31, %v907_v1  ;;  %v681_v38 = vsel %vm679_vm12, %v1285_v24, %v680_v21  ;;  %v684_v30 = vsel %vm682_vm14, %v683_v2, %v1287_v11  ;;  %v766_v28 = vor.u32 4788187, %v765_v8 }
 0x155   :  { %vm793_vm0 = vcmp.lt.s32.totalorder %v1588_v18, 0  ;;  %v853_v60 = vshrl.u32 %v852_v62, 30  ;;  %v2175_v12 = vadd.s32 %v2113_v58, %v2140_v49  ;;  %v2177_v0 = vshll.u32 %v903_v51, 8 }
 0x156   :  { %v910_v9 = vsub.s32 32, %v909_v59  ;;  %v1207_v63 = vadd.s32 4294967169, %v1003_v52  ;;  %v767_v40 = vand.u32 2147483647, %v766_v28  ;;  %v769_v27 = vcvt.s32.f32 %v762_v5 }
 0x157   :  { %v854_v35 = vshll.u32 %v853_v60, 30  ;;  %v1007_v48 = vor.u32 8388608, %v2164_v53  ;;  %v2181_v57 = vsel %vm678_vm10, %v681_v38, %v684_v30  ;;  %v912_v3 = vshll.u32 %v1366_v37, %v909_v59 }
 0x158   :  { %v913_v55 = vshrl.u32 %v1367_v41, %v910_v9  ;;  %v916_v46 = vshrl.u32 %v1368_v43, %v910_v9  ;;  %v919_v15 = vshrl.u32 %v1369_v45, %v910_v9  ;;  %v770_v58 = vmul.f32 %v769_v27, %v767_v40 }
 0x159   :  { %v2186_v49 = vsub.s32 %v851_v56, %v854_v35  ;;  %v922_v24 = vshrl.u32 %v1370_v47, %v910_v9  ;;  %v877_v17 = vsub.s32 4, %v853_v60  ;;  %v908_v14 = vshrl.u32 %v907_v1, 5 }
 0x15a   :  { %v915_v44 = vshll.u32 %v1367_v41, %v909_v59  ;;  %v918_v22 = vshll.u32 %v1368_v43, %v909_v59  ;;  %v771_v11 = vxor.u32 2147483648, %v770_v58  ;;  %v914_v36 = vor.u32 %v913_v55, %v912_v3 }
 0x15b   :  { %v857_v20 = vsub.s32 0, %v2186_v49  ;;  %v921_v23 = vshll.u32 %v1369_v45, %v909_v59  ;;  %vm2196_vm1 = vcmp.le.f32.partialorder %v791_v33, 0.7853982  ;;  %v924_v21 = vshll.u32 %v1370_v47, %v909_v59 }
 0x15c   :  { %v917_v34 = vor.u32 %v916_v46, %v915_v44  ;;  %v920_v13 = vor.u32 %v919_v15, %v918_v22  ;;  %v925_v4 = vshrl.u32 %v1371_v54, %v910_v9  ;;  %v772_v10 = vsel %vm689_vm15, %v771_v11, %v770_v58 }
 0x15d   :  { %v1200_v56 = vmin.u32 %v857_v20, %v2186_v49  ;;  %v923_v51 = vor.u32 %v922_v24, %v921_v23  ;;  %v1009_v1 = vadd.s32 1, %v1207_v63  ;;  %vm675_vm2 = vweird.f32 %v1584_v16 }
 0x15e   :  { %v775_v33 = vsel %vm2081_vm13, %v1586_v39, %v772_v10  ;;  %v878_v52 = vsel %vm793_vm0, %v877_v17, %v853_v60  ;;  %v911_v5 = vshrl.u32 %v1366_v37, %v910_v9  ;;  %v926_v8 = vor.u32 %v925_v4, %v924_v21 }
 0x15f   :  { %1288 = vcosq.f32 %v775_v33  ;;  %v859_v62 = vclz %v1200_v56  ;;  %vm927_vm3 = vcmp.lt.s32.totalorder %v908_v14, 1  ;;  %vm930_vm15 = vcmp.lt.s32.totalorder %v908_v14, 4 }
 0x160   :  { %1290 = vsinq.f32 %v775_v33  ;;  %vm928_vm4 = vcmp.lt.s32.totalorder %v908_v14, 2  ;;  %v932_v59 = vsel %vm930_vm15, %v920_v13, 2102212464  ;;  %v935_v38 = vsel %vm927_vm3, %v914_v36, %v917_v34 }
 0x161   :  { %v1201_v30 = vadd.s32 4294967294, %v859_v62  ;;  %vm929_vm9 = vcmp.lt.s32.totalorder %v908_v14, 3  ;;  %v936_v28 = vsel %vm930_vm15, %v923_v51, 920167782  ;;  %v939_v63 = vsel %vm927_vm3, %v917_v34, %v920_v13 }
 0x162   :  { %v931_v29 = vsel %vm927_vm3, %v911_v5, %v914_v36  ;;  %v937_v40 = vsel %vm929_vm9, %v920_v13, %v936_v28  ;;  %v940_v27 = vsel %vm930_vm15, %v926_v8, 1326507024  ;;  %vm1010_vm13 = vcmp.gt.s32.totalorder %v1009_v1, 0 }
 0x163   :  { %vm1202_vm5 = vcmp.lt.s32.totalorder %v1201_v30, 0  ;;  %v933_v60 = vsel %vm929_vm9, %v917_v34, %v932_v59  ;;  %v938_v9 = vsel %vm928_vm4, %v935_v38, %v937_v40  ;;  %v941_v35 = vsel %vm929_vm9, %v923_v51, %v940_v27 }
 0x164   :  { %v862_v55 = vsel %vm1202_vm5, 0, %v1201_v30  ;;  %v942_v46 = vsel %vm928_vm4, %v939_v63, %v941_v35  ;;  %v2215_v15 = vmul.u32.u64.low %v2177_v0, %v938_v9  ;;  %v2216_v58 = vmul.u32.u64.high %v2177_v0, %v938_v9, %v2215_v15 }
 0x165   :  { %vm783_vm6 = vcmp.eq.s32.totalorder %v2170_v61, 0  ;;  %vm786_vm7 = vcmp.eq.s32.totalorder %v2170_v61, 2  ;;  %v863_v3 = vsub.s32 32, %v862_v55  ;;  %v867_v24 = vsub.s32 4294967266, %v862_v55 }
 0x166   :  { %v880_v17 = vsel %vm2196_vm1, 0, %v878_v52  ;;  %v1011_v44 = vsel %vm1010_vm13, %v1009_v1, 0  ;;  %v934_v22 = vsel %vm928_vm4, %v931_v29, %v933_v60  ;;  %v2231_v23 = vsel %vm675_vm2, nan, %v2181_v57 }
 0x167   :  { %v2225_v11 = vmul.u32.u64.low %v2177_v0, %v942_v46  ;;  %v2226_v20 = vmul.u32.u64.high %v2177_v0, %v942_v46, %v2225_v11  ;;  %v1013_v36 = vand.u32 31, %v1011_v44  ;;  %v864_v34 = vshll.u32 %v2186_v49, %v862_v55 }
 0x168   :  { %v865_v13 = vshrl.u32 %v2175_v12, %v863_v3  ;;  %v868_v21 = vadd.s32 127, %v867_v24  ;;  %vm782_vm8 = vcmp.lt.s32.totalorder %v2170_v61, 2  ;;  %v884_v4 = vadd.s32 3, %v880_v17 }
 0x169   :  { %v953_v14 = vadd.s32 1, %v2216_v58  ;;  %v1014_v10 = vsub.s32 32, %v1013_v36  ;;  %v2239_v56 = vshll.u32 %v1007_v48, 8  ;;  %v1289_v51 = vpop.eup %1288  ;;  %v950_v57 = vmul.u32 %v2177_v0, %v934_v22 }
 0x16a   :  { %v866_v1 = vor.u32 %v865_v13, %v864_v34  ;;  %v869_v16 = vshll.u32 %v868_v21, 23  ;;  %v2242_v33 = vshrl.u32 %v1011_v44, 5  ;;  %v1291_v49 = vpop.eup %1290  ;;  %v787_v12 = vxor.u32 2147483648, %v1289_v51 }
 0x16b   :  { %vm952_vm10 = vc.u32 %v2226_v20, %v2215_v15  ;;  %v1016_v52 = vshll.u32 %v1366_v37, %v1013_v36  ;;  %v1019_v5 = vshll.u32 %v1367_v41, %v1013_v36  ;;  %v784_v8 = vxor.u32 2147483648, %v1291_v49 }
 0x16c   :  { %v870_v53 = vor.u32 4788187, %v869_v16  ;;  %v954_v48 = vsel %vm952_vm10, %v953_v14, %v2216_v58  ;;  %v1022_v62 = vshll.u32 %v1368_v43, %v1013_v36  ;;  %v1017_v0 = vshrl.u32 %v1367_v41, %v1014_v10 }
 0x16d   :  { %v955_v59 = vadd.s32 %v954_v48, %v950_v57  ;;  %v1020_v38 = vshrl.u32 %v1368_v43, %v1014_v10  ;;  %v1025_v30 = vshll.u32 %v1369_v45, %v1013_v36  ;;  %v873_v63 = vcvt.s32.f32 %v866_v1  ;;  %v1116_v1 = vpop.permute.xlu1 %1115 }
 0x16e   :  { %v871_v28 = vand.u32 2147483647, %v870_v53  ;;  %v1023_v29 = vshrl.u32 %v1369_v45, %v1014_v10  ;;  %v1026_v40 = vshrl.u32 %v1370_v47, %v1014_v10  ;;  %v785_v27 = vsel %vm783_vm6, %v1289_v51, %v784_v8 }
 0x16f   :  { %v788_v60 = vsel %vm786_vm7, %v787_v12, %v1291_v49  ;;  %v956_v9 = vadd.s32 536870912, %v955_v59  ;;  %v1018_v35 = vor.u32 %v1017_v0, %v1016_v52  ;;  %vm779_vm11 = vweird.f32 %v1586_v39 }
 0x170   :  { %v874_v41 = vmul.f32 %v873_v63, %v871_v28  ;;  %v1021_v43 = vor.u32 %v1020_v38, %v1019_v5  ;;  %v1024_v55 = vor.u32 %v1023_v29, %v1022_v62  ;;  %v1027_v46 = vor.u32 %v1026_v40, %v1025_v30 }
 0x171   :  { %v2260_v58 = vand.u32 3, %v884_v4  ;;  %v2262_v3 = vshrl.u32 %v956_v9, 30  ;;  %v1028_v45 = vshll.u32 %v1370_v47, %v1013_v36  ;;  %v1029_v24 = vshrl.u32 %v1371_v54, %v1014_v10  ;;  %v2337_v29 = vpop.permute.xlu1 %1120 }
 0x172   :  { %v789_v17 = vsel %vm782_vm8, %v785_v27, %v788_v60  ;;  %v875_v44 = vxor.u32 2147483648, %v874_v41  ;;  %v1015_v22 = vshrl.u32 %v1366_v37, %v1014_v10  ;;  %v1103_v11 = vmul.f32 %v1812_v32, %v1812_v32 }
 0x173   :  { %v958_v34 = vshll.u32 %v2262_v3, 30  ;;  %v1030_v13 = vor.u32 %v1029_v24, %v1028_v45  ;;  %vm1031_vm12 = vcmp.lt.s32.totalorder %v2242_v33, 1  ;;  %vm1034_vm14 = vcmp.lt.s32.totalorder %v2242_v33, 4 }
 0x174   :  { %v876_v47 = vsel %vm793_vm0, %v875_v44, %v874_v41  ;;  %v1036_v54 = vsel %vm1034_vm14, %v1024_v55, 2102212464  ;;  %v1039_v61 = vsel %vm1031_vm12, %v1018_v35, %v1021_v43  ;;  %v1040_v37 = vsel %vm1034_vm14, %v1027_v46, 920167782 }
 0x175   :  { %v879_v32 = vsel %vm2196_vm1, %v1588_v18, %v876_v47  ;;  %v2285_v36 = vsub.s32 %v955_v59, %v958_v34  ;;  %vm1032_vm2 = vcmp.lt.s32.totalorder %v2242_v33, 2  ;;  %vm1033_vm3 = vcmp.lt.s32.totalorder %v2242_v33, 3  ;;  %v1307_v47 = vld [vmem:[#allocation2 + $0x18] sm:$0xff] }
 0x176   :  { %1292 = vcosq.f32 %v879_v32  ;;  %v1035_v21 = vsel %vm1031_vm12, %v1015_v22, %v1018_v35  ;;  %v1037_v4 = vsel %vm1033_vm3, %v1021_v43, %v1036_v54  ;;  %v1041_v14 = vsel %vm1033_vm3, %v1024_v55, %v1040_v37  ;;  %v1305_v35 = vld [vmem:[#allocation2 + $0x8] sm:$0xff] }
 0x177   :  { %1294 = vsinq.f32 %v879_v32  ;;  %v961_v2 = vsub.s32 0, %v2285_v36  ;;  %v1042_v10 = vsel %vm1032_vm2, %v1039_v61, %v1041_v14  ;;  %v1104_v51 = vmul.f32 %v1941_v25, %v1941_v25  ;;  %v1308_v61 = vld [vmem:[#allocation2 + $0x20] sm:$0xff] }
 0x178   :  { %v1043_v16 = vsel %vm1031_vm12, %v1021_v43, %v1024_v55  ;;  %v1044_v57 = vsel %vm1034_vm14, %v1030_v13, 1326507024  ;;  %v2305_v49 = vmul.u32.u64.low %v2239_v56, %v1042_v10  ;;  %v2306_v12 = vmul.u32.u64.high %v2239_v56, %v1042_v10, %v2305_v49 }
 0x179   :  { %v790_v52 = vsel %vm779_vm11, nan, %v789_v17  ;;  %v1204_v5 = vmin.u32 %v961_v2, %v2285_v36  ;;  %v1038_v25 = vsel %vm1032_vm2, %v1035_v21, %v1037_v4  ;;  %v1045_v8 = vsel %vm1033_vm3, %v1027_v46, %v1044_v57  ;;  %v1306_v46 = vld [vmem:[#allocation2 + $0x10] sm:$0xff]  ;;  %v1309_v2 = vld [vmem:[#allocation2 + $0x28] sm:$0xff] }
 0x17a   :  { %v1046_v53 = vsel %vm1032_vm2, %v1043_v16, %v1045_v8  ;;  %v1105_v48 = vmul.f32 %v2040_v26, %v2040_v26  ;;  %v1106_v62 = vmul.f32 %v2144_v31, %v2144_v31  ;;  %v1107_v39 = vmul.f32 %v2168_v50, %v2168_v50 }
 0x17b   :  { %vm887_vm0 = vcmp.eq.s32.totalorder %v2260_v58, 0  ;;  %vm890_vm1 = vcmp.eq.s32.totalorder %v2260_v58, 2  ;;  %v951_v59 = vadd.s32 %v2215_v15, %v2226_v20  ;;  %v963_v0 = vclz %v1204_v5 }
 0x17c   :  { %vm886_vm15 = vcmp.lt.s32.totalorder %v2260_v58, 2  ;;  %v2330_v33 = vmul.u32.u64.low %v2239_v56, %v1046_v53  ;;  %v2331_v38 = vmul.u32.u64.high %v2239_v56, %v1046_v53, %v2330_v33  ;;  %v1054_v26 = vmul.u32 %v2239_v56, %v1038_v25  ;;  %v1304_v56 = vld [vmem:[#allocation2] sm:$0xff] }
 0x17d   :  { %v1108_v31 = vmul.f32 %v2231_v23, %v2231_v23  ;;  %vm883_vm4 = vweird.f32 %v1588_v18  ;;  %v1205_v50 = vadd.s32 4294967294, %v963_v0  ;;  %v1109_v30 = vmul.f32 %v790_v52, %v790_v52 }
 0x17e   :  { %v1123_v28 = vmul.f32 %v1116_v1, %v1103_v11  ;;  %v1124_v63 = vmul.f32 %v1116_v1, %v1104_v51  ;;  %v1057_v15 = vadd.s32 1, %v2306_v12  ;;  %v1125_v20 = vmul.f32 %v1116_v1, %v1105_v48  ;;  %v1310_v51 = vld [vmem:[#allocation2 + $0x30] sm:$0xff] }
 0x17f   :  { %v1126_v40 = vmul.f32 %v1116_v1, %v1106_v62  ;;  %v1127_v27 = vmul.f32 %v1116_v1, %v1107_v39  ;;  %vm1206_vm9 = vcmp.lt.s32.totalorder %v1205_v50, 0  ;;  %v1128_v60 = vmul.f32 %v2337_v29, %v1108_v31 }
 0x180   :  { %v1133_v9 = vadd.f32 %v1304_v56, %v1123_v28  ;;  %v1134_v23 = vadd.f32 %v1305_v35, %v1124_v63  ;;  %v1293_v41 = vpop.eup %1292  ;;  %v966_v43 = vsel %vm1206_vm9, 0, %v1205_v50  ;;  %vm1056_vm13 = vc.u32 %v2331_v38, %v2305_v49 }
 0x181   :  { %v1129_v55 = vmul.f32 %v2337_v29, %v1109_v30  ;;  %v1135_v45 = vadd.f32 %v1306_v46, %v1125_v20  ;;  %v1295_v24 = vpop.eup %1294  ;;  %v891_v17 = vxor.u32 2147483648, %v1293_v41  ;;  %v967_v44 = vsub.s32 32, %v966_v43 }
 0x182   :  { %v968_v22 = vshll.u32 %v2285_v36, %v966_v43  ;;  %v971_v11 = vsub.s32 4294967266, %v966_v43  ;;  %1143 = vst [vmem:[#allocation5] sm:$0xff] %v1133_v9  ;;  %1144 = vst [vmem:[#allocation5 + $0x8] sm:$0xff] %v1134_v23  ;;  %v888_v34 = vxor.u32 2147483648, %v1295_v24  ;;  %v1058_v13 = vsel %vm1056_vm13, %v1057_v15, %v2306_v12 }
 0x183   :  { %v1136_v54 = vadd.f32 %v1307_v47, %v1126_v40  ;;  %v1137_v37 = vadd.f32 %v1308_v61, %v1127_v27  ;;  %1145 = vst [vmem:[#allocation5 + $0x10] sm:$0xff] %v1135_v45  ;;  %v892_v32 = vsel %vm890_vm1, %v891_v17, %v1295_v24  ;;  %v969_v21 = vshrl.u32 %v951_v59, %v967_v44 }
 0x184   :  { %v972_v4 = vadd.s32 127, %v971_v11  ;;  %v1059_v14 = vadd.s32 %v1058_v13, %v1054_v26  ;;  %v889_v36 = vsel %vm887_vm0, %v1293_v41, %v888_v34  ;;  %v1138_v10 = vadd.f32 %v1309_v2, %v1128_v60  ;;  %v1311_v26 = vld [vmem:[#allocation2 + $0x38] sm:$0xff]  ;;  %v1312_v2 = vld [vmem:[#allocation2 + $0x40] sm:$0xff] }
 0x185   :  { %v1139_v1 = vadd.f32 %v1310_v51, %v1129_v55  ;;  %1146 = vst [vmem:[#allocation5 + $0x18] sm:$0xff] %v1136_v54  ;;  %vm1147_vm5 = vcmask 719872   ;;  %v893_v16 = vsel %vm886_vm15, %v889_v36, %v892_v32  ;;  %v970_v57 = vor.u32 %v969_v21, %v968_v22 }
 0x186   :  { %v973_v12 = vshll.u32 %v972_v4, 23  ;;  %v1060_v52 = vadd.s32 536870912, %v1059_v14  ;;  %1148 = vst.msk [vmem:[#allocation5 + $0x20] sm:$0xff] %vm1147_vm5, %v1137_v37  ;;  %v894_v5 = vsel %vm883_vm4, nan, %v893_v16  ;;  %1149 = vst [vmem:[#allocation5 + $0x28] sm:$0xff] %v1138_v10  ;;  %v981_v0 = vsub.s32 4, %v2262_v3 }
 0x187   :  { %1150 = vst [vmem:[#allocation5 + $0x30] sm:$0xff] %v1139_v1  ;;  %v1110_v53 = vmul.f32 %v894_v5, %v894_v5  ;;  %v977_v62 = vcvt.s32.f32 %v970_v57  ;;  %vm897_vm6 = vcmp.lt.s32.totalorder %v1590_v7, 0  ;;  %vm896_vm7 = vcmp.le.f32.partialorder %v895_v6, 0.7853982 }
 0x188   :  { %v974_v25 = vor.u32 4788187, %v973_v12  ;;  %v1061_v8 = vshrl.u32 %v1060_v52, 30  ;;  %v982_v28 = vsel %vm897_vm6, %v981_v0, %v2262_v3  ;;  %v1055_v9 = vadd.s32 %v2305_v49, %v2331_v38 }
 0x189   :  { %v1130_v59 = vmul.f32 %v2337_v29, %v1110_v53  ;;  %v984_v40 = vsel %vm896_vm7, 0, %v982_v28  ;;  %vm987_vm14 = vweird.f32 %v1590_v7  ;;  %vm1001_vm2 = vcmp.lt.s32.totalorder %v1592_v19, 0 }
 0x18a   :  { %v975_v48 = vand.u32 2147483647, %v974_v25  ;;  %v1062_v39 = vshll.u32 %v1061_v8, 30  ;;  %v988_v60 = vadd.s32 3, %v984_v40  ;;  %v1085_v61 = vsub.s32 4, %v1061_v8 }
 0x18b   :  { %v1140_v31 = vadd.f32 %v1311_v26, %v1130_v59  ;;  %vm1000_vm3 = vcmp.le.f32.partialorder %v999_v42, 0.7853982  ;;  %vm1091_vm4 = vweird.f32 %v1592_v19 }
 0x18c   :  { %v978_v58 = vmul.f32 %v977_v62, %v975_v48  ;;  %v1063_v33 = vsub.s32 %v1059_v14, %v1062_v39  ;;  %v989_v6 = vand.u32 3, %v988_v60  ;;  %v1086_v14 = vsel %vm1001_vm2, %v1085_v61, %v1061_v8  ;;  %v1313_v62 = vld [vmem:[#allocation2 + $0x48] sm:$0xff] }
 0x18d   :  { %1151 = vst [vmem:[#allocation5 + $0x38] sm:$0xff] %v1140_v31 }
 0x18e   :  { %v979_v50 = vxor.u32 2147483648, %v978_v58  ;;  %v1065_v30 = vsub.s32 0, %v1063_v33  ;;  %vm994_vm10 = vcmp.eq.s32.totalorder %v989_v6, 2  ;;  %vm991_vm11 = vcmp.eq.s32.totalorder %v989_v6, 0 }
 0x18f   :  { %vm990_vm12 = vcmp.lt.s32.totalorder %v989_v6, 2 }
 0x190   :  { %v980_v18 = vsel %vm897_vm6, %v979_v50, %v978_v58  ;;  %v1208_v63 = vmin.u32 %v1065_v30, %v1063_v33 }
 0x191   :  { %v983_v15 = vsel %vm896_vm7, %v1590_v7, %v980_v18  ;;  %v1088_v7 = vsel %vm1000_vm3, 0, %v1086_v14 }
 0x192   :  { %1296 = vcosq.f32 %v983_v15  ;;  %v1067_v20 = vclz %v1208_v63  ;;  %v1092_v51 = vadd.s32 3, %v1088_v7 }
 0x193   :  { %1298 = vsinq.f32 %v983_v15 }
 0x194   :  { %v1209_v27 = vadd.s32 4294967294, %v1067_v20  ;;  %v1093_v1 = vand.u32 3, %v1092_v51 }
 0x196   :  { %vm1210_vm8 = vcmp.lt.s32.totalorder %v1209_v27, 0  ;;  %vm1098_vm0 = vcmp.eq.s32.totalorder %v1093_v1, 2  ;;  %vm1095_vm1 = vcmp.eq.s32.totalorder %v1093_v1, 0  ;;  %vm1094_vm15 = vcmp.lt.s32.totalorder %v1093_v1, 2 }
 0x197   :  { %v1070_v56 = vsel %vm1210_vm8, 0, %v1209_v27 }
 0x198   :  { %v1071_v35 = vsub.s32 32, %v1070_v56  ;;  %v1075_v23 = vsub.s32 4294967266, %v1070_v56  ;;  %v1072_v41 = vshll.u32 %v1063_v33, %v1070_v56 }
 0x19a   :  { %v1073_v43 = vshrl.u32 %v1055_v9, %v1071_v35  ;;  %v1076_v3 = vadd.s32 127, %v1075_v23 }
 0x19c   :  { %v1297_v55 = vpop.eup %1296  ;;  %v1074_v46 = vor.u32 %v1073_v43, %v1072_v41  ;;  %v1077_v45 = vshll.u32 %v1076_v3, 23 }
 0x19d   :  { %v1299_v24 = vpop.eup %1298  ;;  %v995_v17 = vxor.u32 2147483648, %v1297_v55 }
 0x19e   :  { %v992_v44 = vxor.u32 2147483648, %v1299_v24  ;;  %v1078_v22 = vor.u32 4788187, %v1077_v45  ;;  %v1081_v49 = vcvt.s32.f32 %v1074_v46 }
 0x19f   :  { %v996_v11 = vsel %vm994_vm10, %v995_v17, %v1299_v24 }
 0x1a0   :  { %v993_v34 = vsel %vm991_vm11, %v1297_v55, %v992_v44  ;;  %v1079_v13 = vand.u32 2147483647, %v1078_v22 }
 0x1a1   :  { %v997_v38 = vsel %vm990_vm12, %v993_v34, %v996_v11 }
 0x1a2   :  { %v998_v47 = vsel %vm987_vm14, nan, %v997_v38  ;;  %v1082_v54 = vmul.f32 %v1081_v49, %v1079_v13 }
 0x1a3   :  { %v1111_v37 = vmul.f32 %v998_v47, %v998_v47 }
 0x1a4   :  { %v1083_v32 = vxor.u32 2147483648, %v1082_v54 }
 0x1a5   :  { %v1131_v21 = vmul.f32 %v2337_v29, %v1111_v37 }
 0x1a6   :  { %v1084_v4 = vsel %vm1001_vm2, %v1083_v32, %v1082_v54 }
 0x1a7   :  { %v1087_v36 = vsel %vm1000_vm3, %v1592_v19, %v1084_v4  ;;  %v1141_v10 = vadd.f32 %v1312_v2, %v1131_v21 }
 0x1a8   :  { %1300 = vcosq.f32 %v1087_v36 }
 0x1a9   :  { %1302 = vsinq.f32 %v1087_v36  ;;  %1152 = vst [vmem:[#allocation5 + $0x40] sm:$0xff] %v1141_v10 }
 0x1b2   :  { %v1301_v16 = vpop.eup %1300 }
 0x1b3   :  { %v1303_v57 = vpop.eup %1302  ;;  %v1099_v12 = vxor.u32 2147483648, %v1301_v16 }
 0x1b4   :  { %v1096_v52 = vxor.u32 2147483648, %v1303_v57 }
 0x1b5   :  { %v1100_v5 = vsel %vm1098_vm0, %v1099_v12, %v1303_v57 }
 0x1b6   :  { %v1097_v42 = vsel %vm1095_vm1, %v1301_v16, %v1096_v52 }
 0x1b7   :  { %v1101_v25 = vsel %vm1094_vm15, %v1097_v42, %v1100_v5 }
 0x1b8   :  { %v1102_v8 = vsel %vm1091_vm4, nan, %v1101_v25 }
 0x1b9   :  { %v1112_v53 = vmul.f32 %v1102_v8, %v1102_v8 }
 0x1bb   :  { %v1132_v48 = vmul.f32 %v2337_v29, %v1112_v53 }
 0x1bd   :  { %v1142_v39 = vadd.f32 %v1313_v62, %v1132_v48 }
 0x1bf   :  { %1153 = vst.msk [vmem:[#allocation5 + $0x48] sm:$0xff] %vm1147_vm5, %v1142_v39 }
 0x1c0   :  { %1347 = shalt.err (!%p1344_p12)
}
 0x1c1   :  { %s1348_s9 = scalar_lea.hbm %s2391_s3, 1280 }
 0x1c2   :  { %p1349_p13 = scmp.ne.s32.totalorder %s2391_s3, %s1348_s9  ;;  %p1352_p0 = scmp.lt.u32.totalorder %s1348_s9, %s2391_s3 }
 0x1c4   :  { %p1354_p1 = pnand %p1352_p0, %p1349_p13 }
 0x1c6   :  { %1357 = shalt.err (!%p1354_p1)
}
 0x1c7   :  { %1165 = dma.vmem_to_hbm [thread:$0]  %s1160_s2, 1280, %s2391_s3, [#allocation4], %s1363_s22, %s1363_s22, %s1364_s23  }
 0x1c8   :  { %1360 = dma.done.wait [#allocation4], 1280  }
 0x1c9   :  { %1361 = vsyncadd [#allocation4], 4294966016 }
 0x1ca   :  { %1169 = vsyncpa [#allocation3], 1 }
 0x1cb   :  { %1170 = vsyncpa [#allocation4], 1 }

</bundles_post_ra>
